<compile_context>
chip_gen: v7x
topology: tpu7x:2x2x1
jax: 0.10.0
libtpu: 0.0.40
codegen_flags: <defaults>
</compile_context>

<pallas_src>
import jax
import jax.numpy as jnp
import numpy as np
from jax.experimental import pallas as pl
from jax.experimental.pallas import tpu as pltpu  # noqa: F401  (kept for grid/megacore extension)

# ----------------------------- model configuration ---------------------------
E = 4            # n_channels (EEG electrodes)
T = 128          # n_times (multiple of 128 so the final pool collapses time)
NCLS = 2         # n_classes
F1, K1 = 16, 51  # temporal conv filters / kernel
F2 = 32          # spatial / separable conv features
KD = 15          # depthwise kernel
T1 = T // 4
T2 = T1 // 8
T3 = T2 // 4
A = F2 * T3      # attention_size = 32 * (n_times // 128)
HID = 64
EPS_BN = 1e-5
EPS_LN = 1e-5

assert T3 == 1, "fused kernel assumes the final avg-pool collapses time (T == 128)"

# depthwise-conv taps that can touch a valid sample of the length-T2 signal
_SMAX = min(T2 - 1, KD // 2)
_DW_SHIFTS = tuple(range(-_SMAX, _SMAX + 1))
NSH = len(_DW_SHIFTS)

# column layout of the packed constant slab `cvec` (64 rows x 16 lanes)
C_SHIFT2 = 0
C_SHIFT3 = 1
C_DW0 = 2                 # NSH columns of per-channel depthwise taps
C_B1 = C_DW0 + NSH        # 9
C_G = C_B1 + 1            # 10
C_BE = C_G + 1            # 11
C_B2 = C_BE + 1           # 12
C_BC1 = C_B2 + 1          # 13
C_BC2 = C_BC1 + 1         # 14
CVEC_COLS = 16


def _elu(x):
    # ELU(alpha=1); clamp the exp argument so the unselected branch stays finite.
    return jnp.where(x > 0, x, jnp.exp(jnp.minimum(x, 0.0)) - 1.0)


_SQRT1_2 = 0.7071067811865476


def _erf_approx(x):
    # Abramowitz & Stegun 7.1.26, |err| < 1.5e-7; uses only exp/mul/add (EUP/VPU).
    a1, a2, a3, a4, a5 = 0.254829592, -0.284496736, 1.421413741, -1.453152027, 1.061405429
    pc = 0.3275911
    ax = jnp.abs(x)
    t = 1.0 / (1.0 + pc * ax)
    poly = ((((a5 * t + a4) * t + a3) * t + a2) * t + a1) * t
    y = 1.0 - poly * jnp.exp(-ax * ax)
    return jnp.where(x >= 0, y, -y)


def _gelu(x):
    # exact (erf) GELU, matching nn.GELU() default
    return 0.5 * x * (1.0 + _erf_approx(x * _SQRT1_2))


# --------------------------------- fused kernel -------------------------------
def eeg_fused_kernel(xr_ref, wband_ref, shift1_ref, ws2_ref, m_ref, pw_ref,
                     w1_ref, w2_ref, wc1_ref, wc2_ref, cvec_ref, out_ref):
    B = xr_ref.shape[0] // E
    n = F1 * T1
    cv = cvec_ref[...]                                     # packed constant slab

    # ---- temporal block: banded/Toeplitz conv matmul (zero padding + BN scale
    #      folded into the bf16 weight), bias, ELU.  (B*E, T) @ (T, 4*F1*T1).
    y1 = jnp.dot(xr_ref[...], wband_ref[...], preferred_element_type=jnp.float32)
    y1 = _elu(y1 + shift1_ref[...])                        # (B*E, 4*F1*T1) f32

    # ---- AvgPool(4): columns ordered (d, f, t1) -> four lane-aligned VPU slabs.
    y1p = 0.25 * (y1[:, 0:n] + y1[:, n:2 * n] + y1[:, 2 * n:3 * n] + y1[:, 3 * n:4 * n])

    # ---- reorder (b,e)-rows x (f,t1)-lanes -> (f,e)-rows x (b,t1)-lanes,
    #      entirely at VALUE level (static slices + concats -> XLU/VPU shifts);
    #      no scratch ref, no masked partial stores, no VMEM round trip.
    xs = jnp.concatenate(
        [jnp.concatenate(
            [y1p[b * E:(b + 1) * E, f * T1:(f + 1) * T1] for f in range(F1)],
            axis=0)
         for b in range(B)],
        axis=1)                                            # (F1*E, B*T1)

    # ---- spatial block: conv (BN scale folded) + bias + ELU, batch on lanes.
    z2 = _elu(jnp.dot(ws2_ref[...], xs, preferred_element_type=jnp.float32)
              + cv[0:F2, C_SHIFT2:C_SHIFT2 + 1])           # (F2, B*T1)

    # ---- fused AvgPool(8) + depthwise time-shifts: ONE matmul against the
    #      host-built selection matrix, then 7 per-channel slab FMAs on the VPU.
    dws = jnp.dot(z2, m_ref[...], preferred_element_type=jnp.float32)  # (F2, NSH*B*T2)
    w = B * T2
    dwout = cv[0:F2, C_DW0:C_DW0 + 1] * dws[:, 0:w]
    for si in range(1, NSH):
        dwout = dwout + cv[0:F2, C_DW0 + si:C_DW0 + si + 1] * dws[:, si * w:(si + 1) * w]

    # ---- pointwise conv (BN scale folded) + bias + ELU.
    z3 = _elu(jnp.dot(pw_ref[...], dwout, preferred_element_type=jnp.float32)
              + cv[0:F2, C_SHIFT3:C_SHIFT3 + 1])           # (F2, B*T2), cols (t2, b)

    # ---- AvgPool(4) over t2: columns are (t2, b)-ordered -> four slab adds.
    featT = z3[:, 0:B]
    for t2 in range(1, T2):
        featT = featT + z3[:, t2 * B:(t2 + 1) * B]
    featT = featT * (1.0 / T2)                             # (A, B)  (T3 == 1)

    # ---- attention block (Linear -> LayerNorm -> GELU -> Linear) + residual,
    #      computed feature-major so no transpose is needed in-kernel.
    h = jnp.dot(w1_ref[...], featT, preferred_element_type=jnp.float32) + cv[0:A, C_B1:C_B1 + 1]
    mu = jnp.mean(h, axis=0, keepdims=True)
    var = jnp.mean((h - mu) ** 2, axis=0, keepdims=True)
    h = (h - mu) * jax.lax.rsqrt(var + EPS_LN)
    h = h * cv[0:A, C_G:C_G + 1] + cv[0:A, C_BE:C_BE + 1]
    h = _gelu(h)
    h = jnp.dot(w2_ref[...], h, preferred_element_type=jnp.float32) + cv[0:A, C_B2:C_B2 + 1]
    z = featT + h

    # ---- classifier: Linear -> ELU -> Linear.
    c = _elu(jnp.dot(wc1_ref[...], z, preferred_element_type=jnp.float32)
             + cv[0:HID, C_BC1:C_BC1 + 1])
    out_ref[...] = (jnp.dot(wc2_ref[...], c, preferred_element_type=jnp.float32)
                    + cv[0:NCLS, C_BC2:C_BC2 + 1])


# ------------------------------ pallas wrapper --------------------------------
def forward(x, kp):
    B = x.shape[0]
    # pool/shift matrices bake the batch size in -> make it an explicit invariant.
    assert B == kp['batch'], "kernel params were folded for a different batch size"
    xr = x.reshape(B * E, T).astype(jnp.bfloat16)          # bf16 LHS for the MXU

    inputs = [xr, kp['wband'], kp['shift1'], kp['ws2'], kp['m'], kp['pw'],
              kp['w1'], kp['w2'], kp['wc1'], kp['wc2'], kp['cvec']]
    in_specs = [pl.BlockSpec(a.shape, lambda *_, nd=a.ndim: (0,) * nd)
                for a in inputs]

    flops = (2 * (B * E) * T * (4 * F1 * T1)            # temporal banded matmul
             + 2 * F2 * (F1 * E) * (B * T1)             # spatial conv
             + 2 * F2 * (B * T1) * (NSH * B * T2)       # fused pool8 + depthwise shifts
             + 2 * F2 * F2 * (B * T2)                   # pointwise conv
             + 2 * B * (A * A + A * A + HID * A + NCLS * HID))
    trans = (B * E) * (4 * F1 * T1) + F2 * (B * T1) + F2 * (B * T2) + A * B
    bytes_acc = int(sum(int(a.size) * a.dtype.itemsize for a in inputs)) + NCLS * B * 4

    # NOTE: for large B, add a leading "parallel" batch-block grid axis
    # (pltpu.CompilerParams(dimension_semantics=("parallel",))) and rebuild the
    # per-block selection matrices for the per-block batch only.
    outT = pl.pallas_call(
        eeg_fused_kernel,
        out_shape=jax.ShapeDtypeStruct((NCLS, B), jnp.float32),
        in_specs=in_specs,
        out_specs=pl.BlockSpec((NCLS, B), lambda *_: (0, 0)),
        cost_estimate=pl.CostEstimate(flops=int(flops),
                                      transcendentals=int(trans),
                                      bytes_accessed=int(bytes_acc)),
    )(*inputs)
    return outT.T                                          # (B, NCLS)


# --------------------------- host-side param folding ---------------------------
def prepare_kernel_params(p, batch):
    """Fold eval-mode BatchNorm scales into the conv weights and build the
    derived matrices consumed by the fused kernel.  Runs once on the host."""
    # temporal banded (Toeplitz) weight: conv + zero padding + BN scale folded;
    # columns ordered (d, f, t1) with full-res time t_out = 4*t1 + d so the
    # following AvgPool(4) becomes four aligned lane slabs.  Stored in bf16
    # (largest DMA of the kernel); the matmul accumulates in f32.
    w_t = (np.asarray(p['w_t'], np.float32)
           * np.asarray(p['s1'], np.float32).reshape(F1, 1))
    ncol = 4 * F1 * T1
    col = np.arange(ncol)
    d = col // (F1 * T1)
    rem = col % (F1 * T1)
    f = rem // T1
    t1 = rem % T1
    t_out = 4 * t1 + d
    wband = np.zeros((T, ncol), np.float32)
    for k in range(K1):
        t_in = t_out + k - K1 // 2
        valid = (t_in >= 0) & (t_in < T)
        wband[t_in[valid], col[valid]] = w_t[f[valid], k]
    h1 = np.asarray(p['h1'], np.float32).reshape(F1)
    shift1 = h1[f][None, :]                                # (1, 4*F1*T1)

    # fused AvgPool(8) + depthwise-shift selection matrix:
    #   M[(b, t1), si*(B*T2) + t2*B + b] = 1/8  iff  t1 // 8 == t2 + shift_si (valid)
    # output columns ordered (t2, b) so the final AvgPool(4) is 4 slab adds.
    # (O(B^2) in size -- rebuild per batch block when tiling batch in the grid.)
    M = np.zeros((batch * T1, NSH * batch * T2), np.float32)
    for si, s in enumerate(_DW_SHIFTS):
        for b in range(batch):
            for t2 in range(T2):
                u = t2 + s
                if 0 <= u < T2:
                    cidx = si * (batch * T2) + t2 * batch + b
                    M[b * T1 + u * 8: b * T1 + (u + 1) * 8, cidx] = 1.0 / 8.0

    # packed constant slab: BN shifts, depthwise taps, head biases / LN affine.
    w_dw = np.asarray(p['w_dw'], np.float32)
    cvec = np.zeros((HID, CVEC_COLS), np.float32)
    cvec[:F2, C_SHIFT2] = np.asarray(p['h2'], np.float32).ravel()
    cvec[:F2, C_SHIFT3] = np.asarray(p['h3'], np.float32).ravel()
    for si, s in enumerate(_DW_SHIFTS):
        cvec[:F2, C_DW0 + si] = w_dw[:, KD // 2 + s]
    cvec[:A, C_B1] = np.asarray(p['b1'], np.float32).ravel()
    cvec[:A, C_G] = np.asarray(p['g'], np.float32).ravel()
    cvec[:A, C_BE] = np.asarray(p['be'], np.float32).ravel()
    cvec[:A, C_B2] = np.asarray(p['b2'], np.float32).ravel()
    cvec[:HID, C_BC1] = np.asarray(p['bc1'], np.float32).ravel()
    cvec[:NCLS, C_BC2] = np.asarray(p['bc2'], np.float32).ravel()

    return {
        'batch': batch,
        'wband': jnp.asarray(wband, dtype=jnp.bfloat16),   # (T, 4*F1*T1) bf16
        'shift1': jnp.asarray(shift1),                     # (1, 4*F1*T1) f32
        'ws2': (p['w_s'] * p['s2']).astype(jnp.float32),   # BN scale folded, (F2, F1*E)
        'm': jnp.asarray(M),                               # (B*T1, NSH*B*T2)
        'pw': (p['w_pw'] * p['s3']).astype(jnp.float32),   # BN scale folded, (F2, F2)
        # attention + classifier head, stored feature-major (transposed).
        'w1': p['w1t'].T, 'w2': p['w2t'].T,
        'wc1': p['wc1t'].T, 'wc2': p['wc2t'].T,
        'cvec': jnp.asarray(cvec),                         # (64, 16)
    }


# ------------------------------ reference (plain JAX) --------------------------
def reference_forward(x, p):
    hi = jax.lax.Precision.HIGHEST
    B = x.shape[0]
    xpad = jnp.pad(x, ((0, 0), (0, 0), (K1 // 2, K1 // 2)))
    cols = jnp.stack([xpad[:, :, k:k + T] for k in range(K1)], axis=-1)   # (B,E,T,K1)
    y = jnp.einsum('betk,fk->bfet', cols, p['w_t'], precision=hi)
    y = y * p['s1'].reshape(1, F1, 1, 1) + p['h1'].reshape(1, F1, 1, 1)
    y = _elu(y)
    y = y.reshape(B, F1, E, T1, 4).mean(-1)
    y = y.reshape(B, F1 * E, T1)
    y = jnp.einsum('oc,bct->bot', p['w_s'], y, precision=hi)
    y = y * p['s2'].reshape(1, F2, 1) + p['h2'].reshape(1, F2, 1)
    y = _elu(y)
    y = y.reshape(B, F2, T2, 8).mean(-1)
    ypad = jnp.pad(y, ((0, 0), (0, 0), (KD // 2, KD // 2)))
    acc = sum(p['w_dw'][None, :, k:k + 1] * ypad[:, :, k:k + T2] for k in range(KD))
    y = jnp.einsum('oc,bct->bot', p['w_pw'], acc, precision=hi)
    y = y * p['s3'].reshape(1, F2, 1) + p['h3'].reshape(1, F2, 1)
    y = _elu(y)
    y = y.reshape(B, F2, T3, 4).mean(-1)
    feat = y.reshape(B, F2 * T3)
    h = jnp.dot(feat, p['w1t'], precision=hi) + p['b1']
    mu = h.mean(-1, keepdims=True)
    var = ((h - mu) ** 2).mean(-1, keepdims=True)
    h = (h - mu) / jnp.sqrt(var + EPS_LN) * p['g'] + p['be']
    h = jax.nn.gelu(h, approximate=False)
    h = jnp.dot(h, p['w2t'], precision=hi) + p['b2']
    z = feat + h
    c = _elu(jnp.dot(z, p['wc1t'], precision=hi) + p['bc1'])
    return jnp.dot(c, p['wc2t'], precision=hi) + p['bc2']


# ------------------------------ deterministic params ---------------------------
def _bn_fold(kg, kb, km, kv, nfeat):
    gamma = 1.0 + 0.1 * jax.random.normal(kg, (nfeat,), jnp.float32)
    beta = 0.1 * jax.random.normal(kb, (nfeat,), jnp.float32)
    mean = 0.1 * jax.random.normal(km, (nfeat,), jnp.float32)
    var = 1.0 + 0.1 * jnp.abs(jax.random.normal(kv, (nfeat,), jnp.float32))
    scale = gamma / jnp.sqrt(var + EPS_BN)
    shift = beta - mean * scale
    return scale.reshape(nfeat, 1), shift.reshape(nfeat, 1)


def init_params(key):
    ks = jax.random.split(key, 28)
    nrm = lambda k, shape, std: (std * jax.random.normal(k, shape)).astype(jnp.float32)
    p = {}
    p['w_t'] = nrm(ks[0], (F1, K1), 0.2)
    p['s1'], p['h1'] = _bn_fold(ks[1], ks[2], ks[3], ks[4], F1)
    p['w_s'] = nrm(ks[5], (F2, F1 * E), 0.15)
    p['s2'], p['h2'] = _bn_fold(ks[6], ks[7], ks[8], ks[9], F2)
    p['w_dw'] = nrm(ks[10], (F2, KD), 0.25)
    p['w_pw'] = nrm(ks[11], (F2, F2), 0.2)
    p['s3'], p['h3'] = _bn_fold(ks[12], ks[13], ks[14], ks[15], F2)
    p['w1t'] = nrm(ks[16], (A, A), 0.2)
    p['b1'] = nrm(ks[17], (1, A), 0.05)
    p['g'] = (1.0 + 0.1 * jax.random.normal(ks[18], (1, A))).astype(jnp.float32)
    p['be'] = nrm(ks[19], (1, A), 0.05)
    p['w2t'] = nrm(ks[20], (A, A), 0.2)
    p['b2'] = nrm(ks[21], (1, A), 0.05)
    p['wc1t'] = nrm(ks[22], (A, HID), 0.2)
    p['bc1'] = nrm(ks[23], (1, HID), 0.05)
    p['wc2t'] = nrm(ks[24], (HID, NCLS), 0.2)
    p['bc2'] = nrm(ks[25], (1, NCLS), 0.05)
    return p


if __name__ == "__main__":
    key = jax.random.PRNGKey(0)
    kp_key, kx = jax.random.split(key)
    params = init_params(kp_key)
    x = jax.random.normal(kx, (2, E, T), jnp.float32)   # (batch, n_channels, n_times)

    kparams = prepare_kernel_params(params, batch=x.shape[0])
    out = jax.block_until_ready(forward(x, kparams))

    ref = reference_forward(x, params)
    # Tolerance reflects the deliberate bf16 cast of the dominant banded-conv
    # weight/LHS (f32 accumulation); estimated end-to-end error is ~1e-2, while
    # any real indexing/folding bug produces O(0.1-1) errors.
    np.testing.assert_allclose(np.asarray(out), np.asarray(ref),
                               rtol=2.5e-2, atol=2.5e-2)
    print("KERNEL_OK")
</pallas_src>

<mosaic_0001>
module attributes {stable_mosaic.version = 11 : i64} {
  func.func @eeg_fused_kernel(%arg0: memref<8x128xbf16, #tpu.memory_space<vmem>>, %arg1: memref<128x2048xbf16, #tpu.memory_space<vmem>>, %arg2: memref<1x2048xf32, #tpu.memory_space<vmem>>, %arg3: memref<32x64xf32, #tpu.memory_space<vmem>>, %arg4: memref<64x56xf32, #tpu.memory_space<vmem>>, %arg5: memref<32x32xf32, #tpu.memory_space<vmem>>, %arg6: memref<32x32xf32, #tpu.memory_space<vmem>>, %arg7: memref<32x32xf32, #tpu.memory_space<vmem>>, %arg8: memref<64x32xf32, #tpu.memory_space<vmem>>, %arg9: memref<2x64xf32, #tpu.memory_space<vmem>>, %arg10: memref<64x16xf32, #tpu.memory_space<vmem>>, %arg11: memref<2x2xf32, #tpu.memory_space<vmem>>) attributes {dimension_semantics = [], scalar_prefetch = 0 : i64, scratch_operands = 0 : i64, tpu.core_type = #tpu.core_type<tc>} {
    %c0 = arith.constant 0 : index
    %c0_0 = arith.constant 0 : index
    %0 = vector.load %arg10[%c0, %c0_0] : memref<64x16xf32, #tpu.memory_space<vmem>>, vector<64x16xf32>
    %c0_1 = arith.constant 0 : index
    %c0_2 = arith.constant 0 : index
    %1 = vector.load %arg0[%c0_1, %c0_2] : memref<8x128xbf16, #tpu.memory_space<vmem>>, vector<8x128xbf16>
    %c0_3 = arith.constant 0 : index
    %c0_4 = arith.constant 0 : index
    %2 = vector.load %arg1[%c0_3, %c0_4] : memref<128x2048xbf16, #tpu.memory_space<vmem>>, vector<128x2048xbf16>
    %cst = arith.constant dense<0.000000e+00> : vector<8x2048xf32>
    %3 = tpu.matmul %1, %2, %cst {dimension_numbers = #tpu.dot_dimension_numbers<[1], [0], [0], [1], [0, 0, 1, 1], [], []>} : vector<8x128xbf16>, vector<128x2048xbf16>, vector<8x2048xf32> -> vector<8x2048xf32>
    %c0_5 = arith.constant 0 : index
    %c0_6 = arith.constant 0 : index
    %4 = vector.load %arg2[%c0_5, %c0_6] : memref<1x2048xf32, #tpu.memory_space<vmem>>, vector<1x2048xf32>
    %5 = vector.broadcast %4 : vector<1x2048xf32> to vector<8x2048xf32>
    %6 = arith.addf %3, %5 : vector<8x2048xf32>
    %cst_7 = arith.constant 0.000000e+00 : f32
    %7 = vector.broadcast %cst_7 : f32 to vector<8x2048xf32>
    %8 = arith.cmpf ogt, %6, %7 : vector<8x2048xf32>
    %cst_8 = arith.constant 0.000000e+00 : f32
    %9 = vector.broadcast %cst_8 : f32 to vector<8x2048xf32>
    %10 = arith.minimumf %6, %9 : vector<8x2048xf32>
    %11 = math.exp %10 : vector<8x2048xf32>
    %cst_9 = arith.constant 1.000000e+00 : f32
    %12 = vector.broadcast %cst_9 : f32 to vector<8x2048xf32>
    %13 = arith.subf %11, %12 : vector<8x2048xf32>
    %14 = arith.select %8, %6, %13 : vector<8x2048xi1>, vector<8x2048xf32>
    %15 = vector.extract_strided_slice %14 {offsets = [0, 0], sizes = [8, 512], strides = [1, 1]} : vector<8x2048xf32> to vector<8x512xf32>
    %16 = vector.extract_strided_slice %14 {offsets = [0, 512], sizes = [8, 512], strides = [1, 1]} : vector<8x2048xf32> to vector<8x512xf32>
    %17 = arith.addf %15, %16 : vector<8x512xf32>
    %18 = vector.extract_strided_slice %14 {offsets = [0, 1024], sizes = [8, 512], strides = [1, 1]} : vector<8x2048xf32> to vector<8x512xf32>
    %19 = arith.addf %17, %18 : vector<8x512xf32>
    %20 = vector.extract_strided_slice %14 {offsets = [0, 1536], sizes = [8, 512], strides = [1, 1]} : vector<8x2048xf32> to vector<8x512xf32>
    %21 = arith.addf %19, %20 : vector<8x512xf32>
    %cst_10 = arith.constant 2.500000e-01 : f32
    %22 = vector.broadcast %cst_10 : f32 to vector<8x512xf32>
    %23 = arith.mulf %22, %21 : vector<8x512xf32>
    %24 = vector.extract_strided_slice %23 {offsets = [0, 0], sizes = [4, 32], strides = [1, 1]} : vector<8x512xf32> to vector<4x32xf32>
    %25 = vector.extract_strided_slice %23 {offsets = [0, 32], sizes = [4, 32], strides = [1, 1]} : vector<8x512xf32> to vector<4x32xf32>
    %26 = vector.extract_strided_slice %23 {offsets = [0, 64], sizes = [4, 32], strides = [1, 1]} : vector<8x512xf32> to vector<4x32xf32>
    %27 = vector.extract_strided_slice %23 {offsets = [0, 96], sizes = [4, 32], strides = [1, 1]} : vector<8x512xf32> to vector<4x32xf32>
    %28 = vector.extract_strided_slice %23 {offsets = [0, 128], sizes = [4, 32], strides = [1, 1]} : vector<8x512xf32> to vector<4x32xf32>
    %29 = vector.extract_strided_slice %23 {offsets = [0, 160], sizes = [4, 32], strides = [1, 1]} : vector<8x512xf32> to vector<4x32xf32>
    %30 = vector.extract_strided_slice %23 {offsets = [0, 192], sizes = [4, 32], strides = [1, 1]} : vector<8x512xf32> to vector<4x32xf32>
    %31 = vector.extract_strided_slice %23 {offsets = [0, 224], sizes = [4, 32], strides = [1, 1]} : vector<8x512xf32> to vector<4x32xf32>
    %32 = vector.extract_strided_slice %23 {offsets = [0, 256], sizes = [4, 32], strides = [1, 1]} : vector<8x512xf32> to vector<4x32xf32>
    %33 = vector.extract_strided_slice %23 {offsets = [0, 288], sizes = [4, 32], strides = [1, 1]} : vector<8x512xf32> to vector<4x32xf32>
    %34 = vector.extract_strided_slice %23 {offsets = [0, 320], sizes = [4, 32], strides = [1, 1]} : vector<8x512xf32> to vector<4x32xf32>
    %35 = vector.extract_strided_slice %23 {offsets = [0, 352], sizes = [4, 32], strides = [1, 1]} : vector<8x512xf32> to vector<4x32xf32>
    %36 = vector.extract_strided_slice %23 {offsets = [0, 384], sizes = [4, 32], strides = [1, 1]} : vector<8x512xf32> to vector<4x32xf32>
    %37 = vector.extract_strided_slice %23 {offsets = [0, 416], sizes = [4, 32], strides = [1, 1]} : vector<8x512xf32> to vector<4x32xf32>
    %38 = vector.extract_strided_slice %23 {offsets = [0, 448], sizes = [4, 32], strides = [1, 1]} : vector<8x512xf32> to vector<4x32xf32>
    %39 = vector.extract_strided_slice %23 {offsets = [0, 480], sizes = [4, 32], strides = [1, 1]} : vector<8x512xf32> to vector<4x32xf32>
    %40 = tpu.concatenate %24, %25, %26, %27, %28, %29, %30, %31, %32, %33, %34, %35, %36, %37, %38, %39 in 0 : vector<4x32xf32>, vector<4x32xf32>, vector<4x32xf32>, vector<4x32xf32>, vector<4x32xf32>, vector<4x32xf32>, vector<4x32xf32>, vector<4x32xf32>, vector<4x32xf32>, vector<4x32xf32>, vector<4x32xf32>, vector<4x32xf32>, vector<4x32xf32>, vector<4x32xf32>, vector<4x32xf32>, vector<4x32xf32> -> vector<64x32xf32>
    %41 = vector.extract_strided_slice %23 {offsets = [4, 0], sizes = [4, 32], strides = [1, 1]} : vector<8x512xf32> to vector<4x32xf32>
    %42 = vector.extract_strided_slice %23 {offsets = [4, 32], sizes = [4, 32], strides = [1, 1]} : vector<8x512xf32> to vector<4x32xf32>
    %43 = vector.extract_strided_slice %23 {offsets = [4, 64], sizes = [4, 32], strides = [1, 1]} : vector<8x512xf32> to vector<4x32xf32>
    %44 = vector.extract_strided_slice %23 {offsets = [4, 96], sizes = [4, 32], strides = [1, 1]} : vector<8x512xf32> to vector<4x32xf32>
    %45 = vector.extract_strided_slice %23 {offsets = [4, 128], sizes = [4, 32], strides = [1, 1]} : vector<8x512xf32> to vector<4x32xf32>
    %46 = vector.extract_strided_slice %23 {offsets = [4, 160], sizes = [4, 32], strides = [1, 1]} : vector<8x512xf32> to vector<4x32xf32>
    %47 = vector.extract_strided_slice %23 {offsets = [4, 192], sizes = [4, 32], strides = [1, 1]} : vector<8x512xf32> to vector<4x32xf32>
    %48 = vector.extract_strided_slice %23 {offsets = [4, 224], sizes = [4, 32], strides = [1, 1]} : vector<8x512xf32> to vector<4x32xf32>
    %49 = vector.extract_strided_slice %23 {offsets = [4, 256], sizes = [4, 32], strides = [1, 1]} : vector<8x512xf32> to vector<4x32xf32>
    %50 = vector.extract_strided_slice %23 {offsets = [4, 288], sizes = [4, 32], strides = [1, 1]} : vector<8x512xf32> to vector<4x32xf32>
    %51 = vector.extract_strided_slice %23 {offsets = [4, 320], sizes = [4, 32], strides = [1, 1]} : vector<8x512xf32> to vector<4x32xf32>
    %52 = vector.extract_strided_slice %23 {offsets = [4, 352], sizes = [4, 32], strides = [1, 1]} : vector<8x512xf32> to vector<4x32xf32>
    %53 = vector.extract_strided_slice %23 {offsets = [4, 384], sizes = [4, 32], strides = [1, 1]} : vector<8x512xf32> to vector<4x32xf32>
    %54 = vector.extract_strided_slice %23 {offsets = [4, 416], sizes = [4, 32], strides = [1, 1]} : vector<8x512xf32> to vector<4x32xf32>
    %55 = vector.extract_strided_slice %23 {offsets = [4, 448], sizes = [4, 32], strides = [1, 1]} : vector<8x512xf32> to vector<4x32xf32>
    %56 = vector.extract_strided_slice %23 {offsets = [4, 480], sizes = [4, 32], strides = [1, 1]} : vector<8x512xf32> to vector<4x32xf32>
    %57 = tpu.concatenate %41, %42, %43, %44, %45, %46, %47, %48, %49, %50, %51, %52, %53, %54, %55, %56 in 0 : vector<4x32xf32>, vector<4x32xf32>, vector<4x32xf32>, vector<4x32xf32>, vector<4x32xf32>, vector<4x32xf32>, vector<4x32xf32>, vector<4x32xf32>, vector<4x32xf32>, vector<4x32xf32>, vector<4x32xf32>, vector<4x32xf32>, vector<4x32xf32>, vector<4x32xf32>, vector<4x32xf32>, vector<4x32xf32> -> vector<64x32xf32>
    %58 = tpu.concatenate %40, %57 in 1 : vector<64x32xf32>, vector<64x32xf32> -> vector<64x64xf32>
    %c0_11 = arith.constant 0 : index
    %c0_12 = arith.constant 0 : index
    %59 = vector.load %arg3[%c0_11, %c0_12] : memref<32x64xf32, #tpu.memory_space<vmem>>, vector<32x64xf32>
    %cst_13 = arith.constant dense<0.000000e+00> : vector<32x64xf32>
    %60 = tpu.matmul %59, %58, %cst_13 {dimension_numbers = #tpu.dot_dimension_numbers<[1], [0], [0], [1], [0, 0, 1, 1], [], []>} : vector<32x64xf32>, vector<64x64xf32>, vector<32x64xf32> -> vector<32x64xf32>
    %61 = vector.extract_strided_slice %0 {offsets = [0, 0], sizes = [32, 1], strides = [1, 1]} : vector<64x16xf32> to vector<32x1xf32>
    %62 = vector.broadcast %61 : vector<32x1xf32> to vector<32x64xf32>
    %63 = arith.addf %60, %62 : vector<32x64xf32>
    %cst_14 = arith.constant 0.000000e+00 : f32
    %64 = vector.broadcast %cst_14 : f32 to vector<32x64xf32>
    %65 = arith.cmpf ogt, %63, %64 : vector<32x64xf32>
    %cst_15 = arith.constant 0.000000e+00 : f32
    %66 = vector.broadcast %cst_15 : f32 to vector<32x64xf32>
    %67 = arith.minimumf %63, %66 : vector<32x64xf32>
    %68 = math.exp %67 : vector<32x64xf32>
    %cst_16 = arith.constant 1.000000e+00 : f32
    %69 = vector.broadcast %cst_16 : f32 to vector<32x64xf32>
    %70 = arith.subf %68, %69 : vector<32x64xf32>
    %71 = arith.select %65, %63, %70 : vector<32x64xi1>, vector<32x64xf32>
    %c0_17 = arith.constant 0 : index
    %c0_18 = arith.constant 0 : index
    %72 = vector.load %arg4[%c0_17, %c0_18] : memref<64x56xf32, #tpu.memory_space<vmem>>, vector<64x56xf32>
    %cst_19 = arith.constant dense<0.000000e+00> : vector<32x56xf32>
    %73 = tpu.matmul %71, %72, %cst_19 {dimension_numbers = #tpu.dot_dimension_numbers<[1], [0], [0], [1], [0, 0, 1, 1], [], []>} : vector<32x64xf32>, vector<64x56xf32>, vector<32x56xf32> -> vector<32x56xf32>
    %74 = vector.extract_strided_slice %0 {offsets = [0, 2], sizes = [32, 1], strides = [1, 1]} : vector<64x16xf32> to vector<32x1xf32>
    %75 = vector.extract_strided_slice %73 {offsets = [0, 0], sizes = [32, 8], strides = [1, 1]} : vector<32x56xf32> to vector<32x8xf32>
    %76 = vector.broadcast %74 : vector<32x1xf32> to vector<32x8xf32>
    %77 = arith.mulf %76, %75 : vector<32x8xf32>
    %78 = vector.extract_strided_slice %0 {offsets = [0, 3], sizes = [32, 1], strides = [1, 1]} : vector<64x16xf32> to vector<32x1xf32>
    %79 = vector.extract_strided_slice %73 {offsets = [0, 8], sizes = [32, 8], strides = [1, 1]} : vector<32x56xf32> to vector<32x8xf32>
    %80 = vector.broadcast %78 : vector<32x1xf32> to vector<32x8xf32>
    %81 = arith.mulf %80, %79 : vector<32x8xf32>
    %82 = arith.addf %77, %81 : vector<32x8xf32>
    %83 = vector.extract_strided_slice %0 {offsets = [0, 4], sizes = [32, 1], strides = [1, 1]} : vector<64x16xf32> to vector<32x1xf32>
    %84 = vector.extract_strided_slice %73 {offsets = [0, 16], sizes = [32, 8], strides = [1, 1]} : vector<32x56xf32> to vector<32x8xf32>
    %85 = vector.broadcast %83 : vector<32x1xf32> to vector<32x8xf32>
    %86 = arith.mulf %85, %84 : vector<32x8xf32>
    %87 = arith.addf %82, %86 : vector<32x8xf32>
    %88 = vector.extract_strided_slice %0 {offsets = [0, 5], sizes = [32, 1], strides = [1, 1]} : vector<64x16xf32> to vector<32x1xf32>
    %89 = vector.extract_strided_slice %73 {offsets = [0, 24], sizes = [32, 8], strides = [1, 1]} : vector<32x56xf32> to vector<32x8xf32>
    %90 = vector.broadcast %88 : vector<32x1xf32> to vector<32x8xf32>
    %91 = arith.mulf %90, %89 : vector<32x8xf32>
    %92 = arith.addf %87, %91 : vector<32x8xf32>
    %93 = vector.extract_strided_slice %0 {offsets = [0, 6], sizes = [32, 1], strides = [1, 1]} : vector<64x16xf32> to vector<32x1xf32>
    %94 = vector.extract_strided_slice %73 {offsets = [0, 32], sizes = [32, 8], strides = [1, 1]} : vector<32x56xf32> to vector<32x8xf32>
    %95 = vector.broadcast %93 : vector<32x1xf32> to vector<32x8xf32>
    %96 = arith.mulf %95, %94 : vector<32x8xf32>
    %97 = arith.addf %92, %96 : vector<32x8xf32>
    %98 = vector.extract_strided_slice %0 {offsets = [0, 7], sizes = [32, 1], strides = [1, 1]} : vector<64x16xf32> to vector<32x1xf32>
    %99 = vector.extract_strided_slice %73 {offsets = [0, 40], sizes = [32, 8], strides = [1, 1]} : vector<32x56xf32> to vector<32x8xf32>
    %100 = vector.broadcast %98 : vector<32x1xf32> to vector<32x8xf32>
    %101 = arith.mulf %100, %99 : vector<32x8xf32>
    %102 = arith.addf %97, %101 : vector<32x8xf32>
    %103 = vector.extract_strided_slice %0 {offsets = [0, 8], sizes = [32, 1], strides = [1, 1]} : vector<64x16xf32> to vector<32x1xf32>
    %104 = vector.extract_strided_slice %73 {offsets = [0, 48], sizes = [32, 8], strides = [1, 1]} : vector<32x56xf32> to vector<32x8xf32>
    %105 = vector.broadcast %103 : vector<32x1xf32> to vector<32x8xf32>
    %106 = arith.mulf %105, %104 : vector<32x8xf32>
    %107 = arith.addf %102, %106 : vector<32x8xf32>
    %c0_20 = arith.constant 0 : index
    %c0_21 = arith.constant 0 : index
    %108 = vector.load %arg5[%c0_20, %c0_21] : memref<32x32xf32, #tpu.memory_space<vmem>>, vector<32x32xf32>
    %cst_22 = arith.constant dense<0.000000e+00> : vector<32x8xf32>
    %109 = tpu.matmul %108, %107, %cst_22 {dimension_numbers = #tpu.dot_dimension_numbers<[1], [0], [0], [1], [0, 0, 1, 1], [], []>} : vector<32x32xf32>, vector<32x8xf32>, vector<32x8xf32> -> vector<32x8xf32>
    %110 = vector.extract_strided_slice %0 {offsets = [0, 1], sizes = [32, 1], strides = [1, 1]} : vector<64x16xf32> to vector<32x1xf32>
    %111 = vector.broadcast %110 : vector<32x1xf32> to vector<32x8xf32>
    %112 = arith.addf %109, %111 : vector<32x8xf32>
    %cst_23 = arith.constant 0.000000e+00 : f32
    %113 = vector.broadcast %cst_23 : f32 to vector<32x8xf32>
    %114 = arith.cmpf ogt, %112, %113 : vector<32x8xf32>
    %cst_24 = arith.constant 0.000000e+00 : f32
    %115 = vector.broadcast %cst_24 : f32 to vector<32x8xf32>
    %116 = arith.minimumf %112, %115 : vector<32x8xf32>
    %117 = math.exp %116 : vector<32x8xf32>
    %cst_25 = arith.constant 1.000000e+00 : f32
    %118 = vector.broadcast %cst_25 : f32 to vector<32x8xf32>
    %119 = arith.subf %117, %118 : vector<32x8xf32>
    %120 = arith.select %114, %112, %119 : vector<32x8xi1>, vector<32x8xf32>
    %121 = vector.extract_strided_slice %120 {offsets = [0, 0], sizes = [32, 2], strides = [1, 1]} : vector<32x8xf32> to vector<32x2xf32>
    %122 = vector.extract_strided_slice %120 {offsets = [0, 2], sizes = [32, 2], strides = [1, 1]} : vector<32x8xf32> to vector<32x2xf32>
    %123 = arith.addf %121, %122 : vector<32x2xf32>
    %124 = vector.extract_strided_slice %120 {offsets = [0, 4], sizes = [32, 2], strides = [1, 1]} : vector<32x8xf32> to vector<32x2xf32>
    %125 = arith.addf %123, %124 : vector<32x2xf32>
    %126 = vector.extract_strided_slice %120 {offsets = [0, 6], sizes = [32, 2], strides = [1, 1]} : vector<32x8xf32> to vector<32x2xf32>
    %127 = arith.addf %125, %126 : vector<32x2xf32>
    %cst_26 = arith.constant 2.500000e-01 : f32
    %128 = vector.broadcast %cst_26 : f32 to vector<32x2xf32>
    %129 = arith.mulf %127, %128 : vector<32x2xf32>
    %c0_27 = arith.constant 0 : index
    %c0_28 = arith.constant 0 : index
    %130 = vector.load %arg6[%c0_27, %c0_28] : memref<32x32xf32, #tpu.memory_space<vmem>>, vector<32x32xf32>
    %cst_29 = arith.constant dense<0.000000e+00> : vector<32x2xf32>
    %131 = tpu.matmul %130, %129, %cst_29 {dimension_numbers = #tpu.dot_dimension_numbers<[1], [0], [0], [1], [0, 0, 1, 1], [], []>} : vector<32x32xf32>, vector<32x2xf32>, vector<32x2xf32> -> vector<32x2xf32>
    %132 = vector.extract_strided_slice %0 {offsets = [0, 9], sizes = [32, 1], strides = [1, 1]} : vector<64x16xf32> to vector<32x1xf32>
    %133 = vector.broadcast %132 : vector<32x1xf32> to vector<32x2xf32>
    %134 = arith.addf %131, %133 : vector<32x2xf32>
    %cst_30 = arith.constant dense<0.000000e+00> : vector<2xf32>
    %135 = vector.multi_reduction <add>, %134, %cst_30 [0] : vector<32x2xf32> to vector<2xf32>
    %136 = vector.shape_cast %135 : vector<2xf32> to vector<1x2xf32>
    %cst_31 = arith.constant 3.200000e+01 : f32
    %137 = vector.broadcast %cst_31 : f32 to vector<1x2xf32>
    %138 = arith.divf %136, %137 : vector<1x2xf32>
    %139 = vector.broadcast %138 : vector<1x2xf32> to vector<32x2xf32>
    %140 = arith.subf %134, %139 : vector<32x2xf32>
    %141 = arith.mulf %140, %140 : vector<32x2xf32>
    %cst_32 = arith.constant dense<0.000000e+00> : vector<2xf32>
    %142 = vector.multi_reduction <add>, %141, %cst_32 [0] : vector<32x2xf32> to vector<2xf32>
    %143 = vector.shape_cast %142 : vector<2xf32> to vector<1x2xf32>
    %cst_33 = arith.constant 3.200000e+01 : f32
    %144 = vector.broadcast %cst_33 : f32 to vector<1x2xf32>
    %145 = arith.divf %143, %144 : vector<1x2xf32>
    %146 = vector.broadcast %138 : vector<1x2xf32> to vector<32x2xf32>
    %147 = arith.subf %134, %146 : vector<32x2xf32>
    %cst_34 = arith.constant 9.99999974E-6 : f32
    %148 = vector.broadcast %cst_34 : f32 to vector<1x2xf32>
    %149 = arith.addf %145, %148 : vector<1x2xf32>
    %150 = math.rsqrt %149 : vector<1x2xf32>
    %151 = vector.broadcast %150 : vector<1x2xf32> to vector<32x2xf32>
    %152 = arith.mulf %147, %151 : vector<32x2xf32>
    %153 = vector.extract_strided_slice %0 {offsets = [0, 10], sizes = [32, 1], strides = [1, 1]} : vector<64x16xf32> to vector<32x1xf32>
    %154 = vector.broadcast %153 : vector<32x1xf32> to vector<32x2xf32>
    %155 = arith.mulf %152, %154 : vector<32x2xf32>
    %156 = vector.extract_strided_slice %0 {offsets = [0, 11], sizes = [32, 1], strides = [1, 1]} : vector<64x16xf32> to vector<32x1xf32>
    %157 = vector.broadcast %156 : vector<32x1xf32> to vector<32x2xf32>
    %158 = arith.addf %155, %157 : vector<32x2xf32>
    %cst_35 = arith.constant 5.000000e-01 : f32
    %159 = vector.broadcast %cst_35 : f32 to vector<32x2xf32>
    %160 = arith.mulf %159, %158 : vector<32x2xf32>
    %cst_36 = arith.constant 0.707106769 : f32
    %161 = vector.broadcast %cst_36 : f32 to vector<32x2xf32>
    %162 = arith.mulf %158, %161 : vector<32x2xf32>
    %163 = math.absf %162 : vector<32x2xf32>
    %cst_37 = arith.constant 0.327591091 : f32
    %164 = vector.broadcast %cst_37 : f32 to vector<32x2xf32>
    %165 = arith.mulf %164, %163 : vector<32x2xf32>
    %cst_38 = arith.constant 1.000000e+00 : f32
    %166 = vector.broadcast %cst_38 : f32 to vector<32x2xf32>
    %167 = arith.addf %166, %165 : vector<32x2xf32>
    %cst_39 = arith.constant 1.000000e+00 : f32
    %168 = vector.broadcast %cst_39 : f32 to vector<32x2xf32>
    %169 = arith.divf %168, %167 : vector<32x2xf32>
    %cst_40 = arith.constant 1.06140542 : f32
    %170 = vector.broadcast %cst_40 : f32 to vector<32x2xf32>
    %171 = arith.mulf %170, %169 : vector<32x2xf32>
    %cst_41 = arith.constant -1.45315206 : f32
    %172 = vector.broadcast %cst_41 : f32 to vector<32x2xf32>
    %173 = arith.addf %171, %172 : vector<32x2xf32>
    %174 = arith.mulf %173, %169 : vector<32x2xf32>
    %cst_42 = arith.constant 1.42141378 : f32
    %175 = vector.broadcast %cst_42 : f32 to vector<32x2xf32>
    %176 = arith.addf %174, %175 : vector<32x2xf32>
    %177 = arith.mulf %176, %169 : vector<32x2xf32>
    %cst_43 = arith.constant -0.284496725 : f32
    %178 = vector.broadcast %cst_43 : f32 to vector<32x2xf32>
    %179 = arith.addf %177, %178 : vector<32x2xf32>
    %180 = arith.mulf %179, %169 : vector<32x2xf32>
    %cst_44 = arith.constant 0.254829586 : f32
    %181 = vector.broadcast %cst_44 : f32 to vector<32x2xf32>
    %182 = arith.addf %180, %181 : vector<32x2xf32>
    %183 = arith.mulf %182, %169 : vector<32x2xf32>
    %cst_45 = arith.constant 0.000000e+00 : f32
    %184 = vector.broadcast %cst_45 : f32 to vector<32x2xf32>
    %185 = arith.subf %184, %163 : vector<32x2xf32>
    %186 = arith.mulf %185, %163 : vector<32x2xf32>
    %187 = math.exp %186 : vector<32x2xf32>
    %188 = arith.mulf %183, %187 : vector<32x2xf32>
    %cst_46 = arith.constant 1.000000e+00 : f32
    %189 = vector.broadcast %cst_46 : f32 to vector<32x2xf32>
    %190 = arith.subf %189, %188 : vector<32x2xf32>
    %cst_47 = arith.constant 0.000000e+00 : f32
    %191 = vector.broadcast %cst_47 : f32 to vector<32x2xf32>
    %192 = arith.cmpf oge, %162, %191 : vector<32x2xf32>
    %cst_48 = arith.constant 0.000000e+00 : f32
    %193 = vector.broadcast %cst_48 : f32 to vector<32x2xf32>
    %194 = arith.subf %193, %190 : vector<32x2xf32>
    %195 = arith.select %192, %190, %194 : vector<32x2xi1>, vector<32x2xf32>
    %cst_49 = arith.constant 1.000000e+00 : f32
    %196 = vector.broadcast %cst_49 : f32 to vector<32x2xf32>
    %197 = arith.addf %196, %195 : vector<32x2xf32>
    %198 = arith.mulf %160, %197 : vector<32x2xf32>
    %c0_50 = arith.constant 0 : index
    %c0_51 = arith.constant 0 : index
    %199 = vector.load %arg7[%c0_50, %c0_51] : memref<32x32xf32, #tpu.memory_space<vmem>>, vector<32x32xf32>
    %cst_52 = arith.constant dense<0.000000e+00> : vector<32x2xf32>
    %200 = tpu.matmul %199, %198, %cst_52 {dimension_numbers = #tpu.dot_dimension_numbers<[1], [0], [0], [1], [0, 0, 1, 1], [], []>} : vector<32x32xf32>, vector<32x2xf32>, vector<32x2xf32> -> vector<32x2xf32>
    %201 = vector.extract_strided_slice %0 {offsets = [0, 12], sizes = [32, 1], strides = [1, 1]} : vector<64x16xf32> to vector<32x1xf32>
    %202 = vector.broadcast %201 : vector<32x1xf32> to vector<32x2xf32>
    %203 = arith.addf %200, %202 : vector<32x2xf32>
    %204 = arith.addf %129, %203 : vector<32x2xf32>
    %c0_53 = arith.constant 0 : index
    %c0_54 = arith.constant 0 : index
    %205 = vector.load %arg8[%c0_53, %c0_54] : memref<64x32xf32, #tpu.memory_space<vmem>>, vector<64x32xf32>
    %cst_55 = arith.constant dense<0.000000e+00> : vector<64x2xf32>
    %206 = tpu.matmul %205, %204, %cst_55 {dimension_numbers = #tpu.dot_dimension_numbers<[1], [0], [0], [1], [0, 0, 1, 1], [], []>} : vector<64x32xf32>, vector<32x2xf32>, vector<64x2xf32> -> vector<64x2xf32>
    %207 = vector.extract_strided_slice %0 {offsets = [0, 13], sizes = [64, 1], strides = [1, 1]} : vector<64x16xf32> to vector<64x1xf32>
    %208 = vector.broadcast %207 : vector<64x1xf32> to vector<64x2xf32>
    %209 = arith.addf %206, %208 : vector<64x2xf32>
    %cst_56 = arith.constant 0.000000e+00 : f32
    %210 = vector.broadcast %cst_56 : f32 to vector<64x2xf32>
    %211 = arith.cmpf ogt, %209, %210 : vector<64x2xf32>
    %cst_57 = arith.constant 0.000000e+00 : f32
    %212 = vector.broadcast %cst_57 : f32 to vector<64x2xf32>
    %213 = arith.minimumf %209, %212 : vector<64x2xf32>
    %214 = math.exp %213 : vector<64x2xf32>
    %cst_58 = arith.constant 1.000000e+00 : f32
    %215 = vector.broadcast %cst_58 : f32 to vector<64x2xf32>
    %216 = arith.subf %214, %215 : vector<64x2xf32>
    %217 = arith.select %211, %209, %216 : vector<64x2xi1>, vector<64x2xf32>
    %c0_59 = arith.constant 0 : index
    %c0_60 = arith.constant 0 : index
    %218 = vector.load %arg9[%c0_59, %c0_60] : memref<2x64xf32, #tpu.memory_space<vmem>>, vector<2x64xf32>
    %cst_61 = arith.constant dense<0.000000e+00> : vector<2x2xf32>
    %219 = tpu.matmul %218, %217, %cst_61 {dimension_numbers = #tpu.dot_dimension_numbers<[1], [0], [0], [1], [0, 0, 1, 1], [], []>} : vector<2x64xf32>, vector<64x2xf32>, vector<2x2xf32> -> vector<2x2xf32>
    %220 = vector.extract_strided_slice %0 {offsets = [0, 14], sizes = [2, 1], strides = [1, 1]} : vector<64x16xf32> to vector<2x1xf32>
    %221 = vector.broadcast %220 : vector<2x1xf32> to vector<2x2xf32>
    %222 = arith.addf %219, %221 : vector<2x2xf32>
    %c0_62 = arith.constant 0 : index
    %c0_63 = arith.constant 0 : index
    %223 = vector.load %arg11[%c0_62, %c0_63] : memref<2x2xf32, #tpu.memory_space<vmem>>, vector<2x2xf32>
    tpu.vector_store %arg11[%c0_62, %c0_63], %222 {strides = array<i32>} : memref<2x2xf32, #tpu.memory_space<vmem>>, vector<2x2xf32>,
    return
  }
}

</mosaic_0001>

<bundles_post_ra>
// kernel: tpu_custom_call.1
= control target key start
LH: loop header
LB: loop body
LE: loop exit
PB: predicated region body
PF: predicated region fallthrough
CT: control target
= control target key end

     0   :  { %16 = vsyncpa [#allocation3], 0  ;;  %s4303_s0 = inlined_call_operand.vmem [shape: bf16[8,128], index: 0, kind: input, shape index: {}]   ;;  %s4304_s1 = inlined_call_operand.hbm [shape: bf16[128,2048], index: 1, kind: input, shape index: {}]   ;;  %s4305_s2 = inlined_call_operand.vmem [shape: f32[1,2048], index: 2, kind: input, shape index: {}]   ;;  %s4306_s3 = inlined_call_operand.vmem [shape: f32[32,64], index: 3, kind: input, shape index: {}]   ;;  %s4307_s4 = inlined_call_operand.vmem [shape: f32[64,56], index: 4, kind: input, shape index: {}]   ;;  %s4308_s5 = inlined_call_operand.vmem [shape: f32[32,32], index: 5, kind: input, shape index: {}]   ;;  %s4309_s6 = inlined_call_operand.vmem [shape: f32[32,32], index: 6, kind: input, shape index: {}]   ;;  %s4310_s7 = inlined_call_operand.vmem [shape: f32[32,32], index: 7, kind: input, shape index: {}]   ;;  %s4311_s8 = inlined_call_operand.vmem [shape: f32[64,32], index: 8, kind: input, shape index: {}]   ;;  %s4312_s9 = inlined_call_operand.vmem [shape: f32[2,64], index: 9, kind: input, shape index: {}]   ;;  %s4313_s10 = inlined_call_operand.vmem [shape: f32[64,16], index: 10, kind: input, shape index: {}]   ;;  %s4314_s11 = inlined_call_operand.hbm [shape: f32[2,2], index: 11, kind: output, shape index: {}]  }
   0x1   :  { %17 = vsyncpa [#allocation4], 0  ;;  %s3683_s17 = smov [#allocation2]   ;;  %s3635_s21 = scalar_lea.hbm %s4304_s1, 16384 }
   0x2   :  { %s25_s18 = sshll.u32 %s3683_s17, 4  ;;  %p3636_p0 = scmp.ne.s32.totalorder %s4304_s1, %s3635_s21  ;;  %s26_s18 = int_to_ptr.vmem [resolvable:$true] %s25_s18 }
   0x3   :  { %p3639_p1 = scmp.lt.u32.totalorder %s3635_s21, %s4304_s1 }
   0x5   :  { %p3641_p2 = pnand %p3639_p1, %p3636_p0 }
   0x7   :  { %3644 = shalt.err (!%p3641_p2)
}
   0x8   :  { %s3645_s26 = scalar_lea.vmem %s26_s18, 16384  ;;  %p3650_p4 = scmp.lt.s32.totalorder %s26_s18, %s26_s18 }
   0x9   :  { %p3646_p3 = scmp.ne.s32.totalorder %s26_s18, %s3645_s26  ;;  %p3651_p5 = scmp.lt.s32.totalorder %s3645_s26, %s3645_s26 }
   0xb   :  { %p3652_p6 = por %p3651_p5, %p3650_p4 }
   0xd   :  { %p3653_p7 = pnand %p3652_p6, %p3646_p3 }
   0xf   :  { %3656 = shalt.err (!%p3653_p7)
}
  0x10   :  { %s3684_s27 = smov 1024   ;;  %s3685_s28 = smov 64  }
  0x11   :  { %31 = dma.hbm_to_vmem [thread:$0]  %s4304_s1, 16384, %s26_s18, [#allocation3], %s3684_s27, %s3684_s27, %s3685_s28  }
  0x12   :  { %3679 = dma.done.wait [#allocation3], 16384  }
  0x13   :  { %3680 = vsyncadd [#allocation3], 4294950912  ;;  %v3686_v0 = vmov 0   ;;  %v63_v1 = vld [vmem:[#allocation2] sm:$0xff]  ;;  %v64_v3 = vld [vmem:[#allocation2 + $0x8] sm:$0xff]  ;;  %s3688_s16 = smov 96  }
  0x14   :  { %947 = vmatprep.mubr.bf16.mxu0 %v3686_v0  ;;  %988 = vmatprep.mubr.bf16.mxu1 %v3686_v0  ;;  %v71_v2 = vld [vmem:[#allocation2 + $0x40] sm:$0xff]  ;;  %v72_v5 = vld [vmem:[#allocation2 + $0x48] sm:$0xff]  ;;  %v65_v63 = vld [vmem:[#allocation2 + $0x10] sm:$0xff]  ;;  %s3697_s27 = smov 112   ;;  %s3699_s29 = smov 88  }
  0x15   :  { %3512 = vset.pattern.permute.xlu0 %v3686_v0  ;;  %3513 = vset.pattern.permute.xlu1 %v3686_v0  ;;  %v2952_v4 = vcombine.high %v63_v1, %v71_v2  ;;  %v2951_v6 = vcombine.low %v63_v1, %v71_v2  ;;  %v79_v7 = vld [vmem:[#allocation2 + $0x80] sm:$0xff]  ;;  %v2954_v9 = vcombine.high %v64_v3, %v72_v5  ;;  %v80_v12 = vld [vmem:[#allocation2 + $0x88] sm:$0xff]  ;;  %v73_v1 = vld [vmem:[#allocation2 + $0x50] sm:$0xff]  ;;  %s3700_s30 = smov 80   ;;  %s3703_s17 = smov 124  }
  0x16   :  { %v87_v8 = vld [vmem:[#allocation2 + $0xc0] sm:$0xff]  ;;  %v2953_v10 = vcombine.low %v64_v3, %v72_v5  ;;  %v88_v13 = vld [vmem:[#allocation2 + $0xc8] sm:$0xff]  ;;  %v66_v2 = vld [vmem:[#allocation2 + $0x18] sm:$0xff]  ;;  %s3704_s18 = smov 122   ;;  %s3714_s15 = smov [#allocation5]  }
  0x17   :  { %v2968_v11 = vcombine.high %v79_v7, %v87_v8  ;;  %v95_v14 = vld [vmem:[#allocation2 + $0x100] sm:$0xff]  ;;  %915 = vmatprep.subr.bf16.mxu0 %v2952_v4  ;;  %v2970_v15 = vcombine.high %v80_v12, %v88_v13  ;;  %v96_v17 = vld [vmem:[#allocation2 + $0x108] sm:$0xff]  ;;  %956 = vmatprep.subr.bf16.mxu1 %v2954_v9  ;;  %v2967_v19 = vcombine.low %v79_v7, %v87_v8  ;;  %v74_v3 = vld [vmem:[#allocation2 + $0x58] sm:$0xff] }
  0x18   :  { %v103_v16 = vld [vmem:[#allocation2 + $0x140] sm:$0xff]  ;;  %v104_v18 = vld [vmem:[#allocation2 + $0x148] sm:$0xff]  ;;  %916 = vmatpush1.bf16.msra.mxu0 %v2951_v6  ;;  %957 = vmatpush1.bf16.msra.mxu1 %v2953_v10  ;;  %v2969_v20 = vcombine.low %v80_v12, %v88_v13  ;;  %v2956_v6 = vcombine.high %v65_v63, %v73_v1  ;;  %v2958_v7 = vcombine.high %v66_v2, %v74_v3  ;;  %v81_v8 = vld [vmem:[#allocation2 + $0x90] sm:$0xff] }
  0x19   :  { %917 = vmatprep.subr.bf16.mxu0 %v2968_v11  ;;  %v2984_v21 = vcombine.high %v95_v14, %v103_v16  ;;  %958 = vmatprep.subr.bf16.mxu1 %v2970_v15  ;;  %v2986_v22 = vcombine.high %v96_v17, %v104_v18  ;;  %v111_v23 = vld [vmem:[#allocation2 + $0x180] sm:$0xff]  ;;  %v112_v25 = vld [vmem:[#allocation2 + $0x188] sm:$0xff]  ;;  %v2983_v27 = vcombine.low %v95_v14, %v103_v16  ;;  %v89_v9 = vld [vmem:[#allocation2 + $0xd0] sm:$0xff] }
  0x1a   :  { %v119_v24 = vld [vmem:[#allocation2 + $0x1c0] sm:$0xff]  ;;  %v120_v26 = vld [vmem:[#allocation2 + $0x1c8] sm:$0xff]  ;;  %v2985_v28 = vcombine.low %v96_v17, %v104_v18  ;;  %v82_v10 = vld [vmem:[#allocation2 + $0x98] sm:$0xff]  ;;  %v2955_v13 = vcombine.low %v65_v63, %v73_v1  ;;  %v2957_v14 = vcombine.low %v66_v2, %v74_v3  ;;  %v2972_v15 = vcombine.high %v81_v8, %v89_v9 }
  0x1b   :  { %v3000_v29 = vcombine.high %v111_v23, %v119_v24  ;;  %v3002_v30 = vcombine.high %v112_v25, %v120_v26  ;;  %v127_v31 = vld [vmem:[#allocation2 + $0x200] sm:$0xff]  ;;  %v128_v33 = vld [vmem:[#allocation2 + $0x208] sm:$0xff]  ;;  %v2999_v35 = vcombine.low %v111_v23, %v119_v24  ;;  %v3001_v36 = vcombine.low %v112_v25, %v120_v26  ;;  %v90_v11 = vld [vmem:[#allocation2 + $0xd8] sm:$0xff] }
  0x1c   :  { %918 = vmatpush1.bf16.msra.mxu0 %v2967_v19  ;;  %959 = vmatpush1.bf16.msra.mxu1 %v2969_v20  ;;  %v135_v32 = vld [vmem:[#allocation2 + $0x240] sm:$0xff]  ;;  %v136_v34 = vld [vmem:[#allocation2 + $0x248] sm:$0xff]  ;;  %v2974_v16 = vcombine.high %v82_v10, %v90_v11  ;;  %v97_v17 = vld [vmem:[#allocation2 + $0x110] sm:$0xff] }
  0x1d   :  { %919 = vmatprep.subr.bf16.mxu0 %v2984_v21  ;;  %960 = vmatprep.subr.bf16.mxu1 %v2986_v22  ;;  %v3016_v37 = vcombine.high %v127_v31, %v135_v32  ;;  %v3018_v38 = vcombine.high %v128_v33, %v136_v34  ;;  %v143_v39 = vld [vmem:[#allocation2 + $0x280] sm:$0xff]  ;;  %v144_v41 = vld [vmem:[#allocation2 + $0x288] sm:$0xff]  ;;  %v3015_v43 = vcombine.low %v127_v31, %v135_v32  ;;  %v105_v18 = vld [vmem:[#allocation2 + $0x150] sm:$0xff] }
  0x1e   :  { %v151_v40 = vld [vmem:[#allocation2 + $0x2c0] sm:$0xff]  ;;  %v152_v42 = vld [vmem:[#allocation2 + $0x2c8] sm:$0xff]  ;;  %v3017_v44 = vcombine.low %v128_v33, %v136_v34  ;;  %v98_v19 = vld [vmem:[#allocation2 + $0x118] sm:$0xff]  ;;  %v2971_v21 = vcombine.low %v81_v8, %v89_v9  ;;  %v2973_v22 = vcombine.low %v82_v10, %v90_v11  ;;  %v2988_v23 = vcombine.high %v97_v17, %v105_v18 }
  0x1f   :  { %v3032_v45 = vcombine.high %v143_v39, %v151_v40  ;;  %v3034_v46 = vcombine.high %v144_v41, %v152_v42  ;;  %v159_v47 = vld [vmem:[#allocation2 + $0x300] sm:$0xff]  ;;  %v160_v49 = vld [vmem:[#allocation2 + $0x308] sm:$0xff]  ;;  %v3031_v51 = vcombine.low %v143_v39, %v151_v40  ;;  %v3033_v52 = vcombine.low %v144_v41, %v152_v42  ;;  %v106_v20 = vld [vmem:[#allocation2 + $0x158] sm:$0xff] }
  0x20   :  { %920 = vmatpush1.bf16.msra.mxu0 %v2983_v27  ;;  %961 = vmatpush1.bf16.msra.mxu1 %v2985_v28  ;;  %v167_v48 = vld [vmem:[#allocation2 + $0x340] sm:$0xff]  ;;  %v168_v50 = vld [vmem:[#allocation2 + $0x348] sm:$0xff]  ;;  %v2990_v24 = vcombine.high %v98_v19, %v106_v20  ;;  %v113_v25 = vld [vmem:[#allocation2 + $0x190] sm:$0xff] }
  0x21   :  { %921 = vmatprep.subr.bf16.mxu0 %v3000_v29  ;;  %962 = vmatprep.subr.bf16.mxu1 %v3002_v30  ;;  %v3048_v53 = vcombine.high %v159_v47, %v167_v48  ;;  %v3050_v54 = vcombine.high %v160_v49, %v168_v50  ;;  %v175_v55 = vld [vmem:[#allocation2 + $0x380] sm:$0xff]  ;;  %v176_v57 = vld [vmem:[#allocation2 + $0x388] sm:$0xff]  ;;  %v3047_v59 = vcombine.low %v159_v47, %v167_v48  ;;  %v121_v26 = vld [vmem:[#allocation2 + $0x1d0] sm:$0xff] }
  0x22   :  { %v183_v56 = vld [vmem:[#allocation2 + $0x3c0] sm:$0xff]  ;;  %v184_v58 = vld [vmem:[#allocation2 + $0x3c8] sm:$0xff]  ;;  %v3049_v60 = vcombine.low %v160_v49, %v168_v50  ;;  %v114_v27 = vld [vmem:[#allocation2 + $0x198] sm:$0xff]  ;;  %v2987_v29 = vcombine.low %v97_v17, %v105_v18  ;;  %v2989_v30 = vcombine.low %v98_v19, %v106_v20  ;;  %v3004_v31 = vcombine.high %v113_v25, %v121_v26 }
  0x23   :  { %v3064_v61 = vcombine.high %v175_v55, %v183_v56  ;;  %v3066_v62 = vcombine.high %v176_v57, %v184_v58  ;;  %v3063_v4 = vcombine.low %v175_v55, %v183_v56  ;;  %v3065_v5 = vcombine.low %v176_v57, %v184_v58  ;;  %v3795_v12 = vld [vmem:[%s4303_s0] sm:$0xf]  ;;  %v122_v28 = vld [vmem:[#allocation2 + $0x1d8] sm:$0xff]  ;;  %v129_v33 = vld [vmem:[#allocation2 + $0x210] sm:$0xff] }
  0x24   :  { %922 = vmatpush1.bf16.msra.mxu0 %v2999_v35  ;;  %963 = vmatpush1.bf16.msra.mxu1 %v3001_v36  ;;  %v3006_v32 = vcombine.high %v114_v27, %v122_v28  ;;  %v137_v34 = vld [vmem:[#allocation2 + $0x250] sm:$0xff]  ;;  %v130_v35 = vld [vmem:[#allocation2 + $0x218] sm:$0xff]  ;;  %v67_v2 = vld [vmem:[#allocation2 + $0x20] sm:$0xff] }
  0x25   :  { %923 = vmatprep.subr.bf16.mxu0 %v3016_v37  ;;  %964 = vmatprep.subr.bf16.mxu1 %v3018_v38  ;;  %v138_v36 = vld [vmem:[#allocation2 + $0x258] sm:$0xff]  ;;  %v3003_v37 = vcombine.low %v113_v25, %v121_v26  ;;  %v3005_v38 = vcombine.low %v114_v27, %v122_v28  ;;  %v3020_v39 = vcombine.high %v129_v33, %v137_v34  ;;  %v145_v41 = vld [vmem:[#allocation2 + $0x290] sm:$0xff]  ;;  %v75_v3 = vld [vmem:[#allocation2 + $0x60] sm:$0xff] }
  0x26   :  { %v3022_v40 = vcombine.high %v130_v35, %v138_v36  ;;  %v153_v42 = vld [vmem:[#allocation2 + $0x2d0] sm:$0xff]  ;;  %v2960_v8 = vcombine.high %v67_v2, %v75_v3  ;;  %v83_v10 = vld [vmem:[#allocation2 + $0xa0] sm:$0xff] }
  0x27   :  { %v3036_v47 = vcombine.high %v145_v41, %v153_v42  ;;  %v161_v49 = vld [vmem:[#allocation2 + $0x310] sm:$0xff]  ;;  %v91_v11 = vld [vmem:[#allocation2 + $0xe0] sm:$0xff] }
  0x28   :  { %924 = vmatpush1.bf16.msra.mxu0 %v3015_v43  ;;  %965 = vmatpush1.bf16.msra.mxu1 %v3017_v44  ;;  %v146_v43 = vld [vmem:[#allocation2 + $0x298] sm:$0xff]  ;;  %v169_v50 = vld [vmem:[#allocation2 + $0x350] sm:$0xff]  ;;  %v2976_v17 = vcombine.high %v83_v10, %v91_v11  ;;  %v99_v19 = vld [vmem:[#allocation2 + $0x120] sm:$0xff] }
  0x29   :  { %925 = vmatprep.subr.bf16.mxu0 %v3032_v45  ;;  %966 = vmatprep.subr.bf16.mxu1 %v3034_v46  ;;  %v154_v44 = vld [vmem:[#allocation2 + $0x2d8] sm:$0xff]  ;;  %v3019_v45 = vcombine.low %v129_v33, %v137_v34  ;;  %v3021_v46 = vcombine.low %v130_v35, %v138_v36  ;;  %v3052_v55 = vcombine.high %v161_v49, %v169_v50  ;;  %v177_v57 = vld [vmem:[#allocation2 + $0x390] sm:$0xff]  ;;  %v107_v20 = vld [vmem:[#allocation2 + $0x160] sm:$0xff] }
  0x2a   :  { %v3038_v48 = vcombine.high %v146_v43, %v154_v44  ;;  %v185_v58 = vld [vmem:[#allocation2 + $0x3d0] sm:$0xff]  ;;  %v2992_v25 = vcombine.high %v99_v19, %v107_v20  ;;  %v115_v27 = vld [vmem:[#allocation2 + $0x1a0] sm:$0xff] }
  0x2b   :  { %v3068_v63 = vcombine.high %v177_v57, %v185_v58  ;;  %v123_v28 = vld [vmem:[#allocation2 + $0x1e0] sm:$0xff] }
  0x2c   :  { %926 = vmatpush1.bf16.msra.mxu0 %v3031_v51  ;;  %967 = vmatpush1.bf16.msra.mxu1 %v3033_v52  ;;  %v162_v51 = vld [vmem:[#allocation2 + $0x318] sm:$0xff]  ;;  %v3008_v33 = vcombine.high %v115_v27, %v123_v28  ;;  %v131_v35 = vld [vmem:[#allocation2 + $0x220] sm:$0xff] }
  0x2d   :  { %927 = vmatprep.subr.bf16.mxu0 %v3048_v53  ;;  %968 = vmatprep.subr.bf16.mxu1 %v3050_v54  ;;  %v170_v52 = vld [vmem:[#allocation2 + $0x358] sm:$0xff]  ;;  %v3035_v53 = vcombine.low %v145_v41, %v153_v42  ;;  %v3037_v54 = vcombine.low %v146_v43, %v154_v44  ;;  %v139_v36 = vld [vmem:[#allocation2 + $0x260] sm:$0xff] }
  0x2e   :  { %v3054_v56 = vcombine.high %v162_v51, %v170_v52  ;;  %v3024_v41 = vcombine.high %v131_v35, %v139_v36  ;;  %v147_v43 = vld [vmem:[#allocation2 + $0x2a0] sm:$0xff] }
  0x2f   :  { %v155_v44 = vld [vmem:[#allocation2 + $0x2e0] sm:$0xff] }
  0x30   :  { %928 = vmatpush1.bf16.msra.mxu0 %v3047_v59  ;;  %969 = vmatpush1.bf16.msra.mxu1 %v3049_v60  ;;  %v178_v59 = vld [vmem:[#allocation2 + $0x398] sm:$0xff] }
  0x31   :  { %929 = vmatprep.subr.bf16.mxu0 %v3064_v61  ;;  %970 = vmatprep.subr.bf16.mxu1 %v3066_v62  ;;  %v186_v60 = vld [vmem:[#allocation2 + $0x3d8] sm:$0xff]  ;;  %v3051_v61 = vcombine.low %v161_v49, %v169_v50  ;;  %v3053_v62 = vcombine.low %v162_v51, %v170_v52  ;;  %v3040_v49 = vcombine.high %v147_v43, %v155_v44  ;;  %v163_v51 = vld [vmem:[#allocation2 + $0x320] sm:$0xff] }
  0x32   :  { %v3070_v1 = vcombine.high %v178_v59, %v186_v60  ;;  %v171_v52 = vld [vmem:[#allocation2 + $0x360] sm:$0xff] }
  0x34   :  { %930 = vmatpush1.bf16.msra.mxu0 %v3063_v4  ;;  %971 = vmatpush1.bf16.msra.mxu1 %v3065_v5  ;;  %v68_v4 = vld [vmem:[#allocation2 + $0x28] sm:$0xff] }
  0x35   :  { %997 = vmatprep.subr.bf16.mxu0 %v2956_v6  ;;  %1038 = vmatprep.subr.bf16.mxu1 %v2958_v7  ;;  %v76_v5 = vld [vmem:[#allocation2 + $0x68] sm:$0xff]  ;;  %v3067_v6 = vcombine.low %v177_v57, %v185_v58  ;;  %v3069_v7 = vcombine.low %v178_v59, %v186_v60  ;;  %v3056_v57 = vcombine.high %v163_v51, %v171_v52  ;;  %v179_v59 = vld [vmem:[#allocation2 + $0x3a0] sm:$0xff] }
  0x36   :  { %v2962_v9 = vcombine.high %v68_v4, %v76_v5  ;;  %v187_v60 = vld [vmem:[#allocation2 + $0x3e0] sm:$0xff] }
  0x37   :  { %948 = vmatmul.mubr.bf16.vlgmr.msra.gmra.mrb[0].mxu0 %v3795_v12  ;;  %989 = vmatmul.mubr.bf16.vlgmr.msra.gmra.mrb[0].mxu1 %v3795_v12 }
  0x38   :  { %998 = vmatpush1.bf16.msra.mxu0 %v2955_v13  ;;  %1039 = vmatpush1.bf16.msra.mxu1 %v2957_v14  ;;  %v84_v13 = vld [vmem:[#allocation2 + $0xa8] sm:$0xff] }
  0x39   :  { %999 = vmatprep.subr.bf16.mxu0 %v2972_v15  ;;  %1040 = vmatprep.subr.bf16.mxu1 %v2974_v16  ;;  %v92_v14 = vld [vmem:[#allocation2 + $0xe8] sm:$0xff]  ;;  %v2959_v15 = vcombine.low %v67_v2, %v75_v3  ;;  %v2961_v16 = vcombine.low %v68_v4, %v76_v5  ;;  %v3072_v2 = vcombine.high %v179_v59, %v187_v60  ;;  %v69_v4 = vld [vmem:[#allocation2 + $0x30] sm:$0xff] }
  0x3a   :  { %1029 = vmatprep.mubr.bf16.mxu0 %v3686_v0  ;;  %1070 = vmatprep.mubr.bf16.mxu1 %v3686_v0  ;;  %v2978_v18 = vcombine.high %v84_v13, %v92_v14  ;;  %v77_v5 = vld [vmem:[#allocation2 + $0x70] sm:$0xff] }
  0x3c   :  { %1000 = vmatpush1.bf16.msra.mxu0 %v2971_v21  ;;  %1041 = vmatpush1.bf16.msra.mxu1 %v2973_v22  ;;  %v100_v21 = vld [vmem:[#allocation2 + $0x128] sm:$0xff] }
  0x3d   :  { %1001 = vmatprep.subr.bf16.mxu0 %v2988_v23  ;;  %1042 = vmatprep.subr.bf16.mxu1 %v2990_v24  ;;  %v108_v22 = vld [vmem:[#allocation2 + $0x168] sm:$0xff]  ;;  %v2975_v23 = vcombine.low %v83_v10, %v91_v11  ;;  %v2977_v24 = vcombine.low %v84_v13, %v92_v14  ;;  %v2964_v10 = vcombine.high %v69_v4, %v77_v5  ;;  %v85_v13 = vld [vmem:[#allocation2 + $0xb0] sm:$0xff] }
  0x3e   :  { %v2994_v26 = vcombine.high %v100_v21, %v108_v22  ;;  %v93_v14 = vld [vmem:[#allocation2 + $0xf0] sm:$0xff] }
  0x40   :  { %1002 = vmatpush1.bf16.msra.mxu0 %v2987_v29  ;;  %1043 = vmatpush1.bf16.msra.mxu1 %v2989_v30  ;;  %v116_v29 = vld [vmem:[#allocation2 + $0x1a8] sm:$0xff] }
  0x41   :  { %1003 = vmatprep.subr.bf16.mxu0 %v3004_v31  ;;  %1044 = vmatprep.subr.bf16.mxu1 %v3006_v32  ;;  %v124_v30 = vld [vmem:[#allocation2 + $0x1e8] sm:$0xff]  ;;  %v2991_v31 = vcombine.low %v99_v19, %v107_v20  ;;  %v2993_v32 = vcombine.low %v100_v21, %v108_v22  ;;  %v2980_v19 = vcombine.high %v85_v13, %v93_v14  ;;  %v101_v21 = vld [vmem:[#allocation2 + $0x130] sm:$0xff] }
  0x42   :  { %v3010_v34 = vcombine.high %v116_v29, %v124_v30  ;;  %v109_v22 = vld [vmem:[#allocation2 + $0x170] sm:$0xff] }
  0x44   :  { %1004 = vmatpush1.bf16.msra.mxu0 %v3003_v37  ;;  %1045 = vmatpush1.bf16.msra.mxu1 %v3005_v38  ;;  %v132_v37 = vld [vmem:[#allocation2 + $0x228] sm:$0xff] }
  0x45   :  { %1005 = vmatprep.subr.bf16.mxu0 %v3020_v39  ;;  %1046 = vmatprep.subr.bf16.mxu1 %v3022_v40  ;;  %v140_v38 = vld [vmem:[#allocation2 + $0x268] sm:$0xff]  ;;  %v3007_v39 = vcombine.low %v115_v27, %v123_v28  ;;  %v3009_v40 = vcombine.low %v116_v29, %v124_v30  ;;  %v2996_v27 = vcombine.high %v101_v21, %v109_v22  ;;  %v117_v29 = vld [vmem:[#allocation2 + $0x1b0] sm:$0xff] }
  0x46   :  { %v3026_v42 = vcombine.high %v132_v37, %v140_v38  ;;  %v125_v30 = vld [vmem:[#allocation2 + $0x1f0] sm:$0xff] }
  0x48   :  { %1006 = vmatpush1.bf16.msra.mxu0 %v3019_v45  ;;  %1047 = vmatpush1.bf16.msra.mxu1 %v3021_v46  ;;  %v148_v45 = vld [vmem:[#allocation2 + $0x2a8] sm:$0xff] }
  0x49   :  { %1007 = vmatprep.subr.bf16.mxu0 %v3036_v47  ;;  %1048 = vmatprep.subr.bf16.mxu1 %v3038_v48  ;;  %v156_v46 = vld [vmem:[#allocation2 + $0x2e8] sm:$0xff]  ;;  %v3023_v47 = vcombine.low %v131_v35, %v139_v36  ;;  %v3025_v48 = vcombine.low %v132_v37, %v140_v38  ;;  %v3012_v35 = vcombine.high %v117_v29, %v125_v30  ;;  %v133_v37 = vld [vmem:[#allocation2 + $0x230] sm:$0xff] }
  0x4a   :  { %v3042_v50 = vcombine.high %v148_v45, %v156_v46  ;;  %v141_v38 = vld [vmem:[#allocation2 + $0x270] sm:$0xff] }
  0x4c   :  { %1008 = vmatpush1.bf16.msra.mxu0 %v3035_v53  ;;  %1049 = vmatpush1.bf16.msra.mxu1 %v3037_v54  ;;  %v164_v53 = vld [vmem:[#allocation2 + $0x328] sm:$0xff] }
  0x4d   :  { %1009 = vmatprep.subr.bf16.mxu0 %v3052_v55  ;;  %1050 = vmatprep.subr.bf16.mxu1 %v3054_v56  ;;  %v172_v54 = vld [vmem:[#allocation2 + $0x368] sm:$0xff]  ;;  %v3039_v55 = vcombine.low %v147_v43, %v155_v44  ;;  %v3041_v56 = vcombine.low %v148_v45, %v156_v46  ;;  %v3028_v43 = vcombine.high %v133_v37, %v141_v38  ;;  %v149_v44 = vld [vmem:[#allocation2 + $0x2b0] sm:$0xff]  ;;  %v150_v46 = vld [vmem:[#allocation2 + $0x2b8] sm:$0xff] }
  0x4e   :  { %v3058_v58 = vcombine.high %v164_v53, %v172_v54  ;;  %v157_v45 = vld [vmem:[#allocation2 + $0x2f0] sm:$0xff] }
  0x50   :  { %1010 = vmatpush1.bf16.msra.mxu0 %v3051_v61  ;;  %1051 = vmatpush1.bf16.msra.mxu1 %v3053_v62  ;;  %v180_v61 = vld [vmem:[#allocation2 + $0x3a8] sm:$0xff] }
  0x51   :  { %1011 = vmatprep.subr.bf16.mxu0 %v3068_v63  ;;  %1052 = vmatprep.subr.bf16.mxu1 %v3070_v1  ;;  %v188_v62 = vld [vmem:[#allocation2 + $0x3e8] sm:$0xff]  ;;  %v3055_v63 = vcombine.low %v163_v51, %v171_v52  ;;  %v3057_v1 = vcombine.low %v164_v53, %v172_v54  ;;  %v165_v52 = vld [vmem:[#allocation2 + $0x330] sm:$0xff]  ;;  %v166_v54 = vld [vmem:[#allocation2 + $0x338] sm:$0xff] }
  0x52   :  { %v3074_v3 = vcombine.high %v180_v61, %v188_v62  ;;  %v173_v53 = vld [vmem:[#allocation2 + $0x370] sm:$0xff] }
  0x54   :  { %1012 = vmatpush1.bf16.msra.mxu0 %v3067_v6  ;;  %1053 = vmatpush1.bf16.msra.mxu1 %v3069_v7  ;;  %v70_v6 = vld [vmem:[#allocation2 + $0x38] sm:$0xff] }
  0x55   :  { %1079 = vmatprep.subr.bf16.mxu0 %v2960_v8  ;;  %1120 = vmatprep.subr.bf16.mxu1 %v2962_v9  ;;  %v78_v7 = vld [vmem:[#allocation2 + $0x78] sm:$0xff]  ;;  %v3071_v8 = vcombine.low %v179_v59, %v187_v60  ;;  %v3073_v9 = vcombine.low %v180_v61, %v188_v62  ;;  %v181_v60 = vld [vmem:[#allocation2 + $0x3b0] sm:$0xff] }
  0x56   :  { %v2966_v11 = vcombine.high %v70_v6, %v78_v7  ;;  %v189_v61 = vld [vmem:[#allocation2 + $0x3f0] sm:$0xff]  ;;  %v182_v62 = vld [vmem:[#allocation2 + $0x3b8] sm:$0xff] }
  0x57   :  { %1030 = vmatmul.mubr.bf16.vlgmr.msra.gmra.mrb[4].mxu0 %v3795_v12  ;;  %1071 = vmatmul.mubr.bf16.vlgmr.msra.gmra.mrb[4].mxu1 %v3795_v12 }
  0x58   :  { %1080 = vmatpush1.bf16.msra.mxu0 %v2959_v15  ;;  %1121 = vmatpush1.bf16.msra.mxu1 %v2961_v16  ;;  %v86_v15 = vld [vmem:[#allocation2 + $0xb8] sm:$0xff] }
  0x59   :  { %1081 = vmatprep.subr.bf16.mxu0 %v2976_v17  ;;  %1122 = vmatprep.subr.bf16.mxu1 %v2978_v18  ;;  %v94_v16 = vld [vmem:[#allocation2 + $0xf8] sm:$0xff]  ;;  %v2963_v17 = vcombine.low %v69_v4, %v77_v5  ;;  %v2965_v18 = vcombine.low %v70_v6, %v78_v7  ;;  %v3075_v5 = vcombine.low %v181_v60, %v189_v61 }
  0x5a   :  { %1111 = vmatprep.mubr.bf16.mxu0 %v3686_v0  ;;  %1152 = vmatprep.mubr.bf16.mxu1 %v3686_v0  ;;  %v2982_v20 = vcombine.high %v86_v15, %v94_v16 }
  0x5c   :  { %1082 = vmatpush1.bf16.msra.mxu0 %v2975_v23  ;;  %1123 = vmatpush1.bf16.msra.mxu1 %v2977_v24  ;;  %v102_v23 = vld [vmem:[#allocation2 + $0x138] sm:$0xff] }
  0x5d   :  { %1083 = vmatprep.subr.bf16.mxu0 %v2992_v25  ;;  %1124 = vmatprep.subr.bf16.mxu1 %v2994_v26  ;;  %v110_v24 = vld [vmem:[#allocation2 + $0x178] sm:$0xff]  ;;  %v2979_v25 = vcombine.low %v85_v13, %v93_v14  ;;  %v2981_v26 = vcombine.low %v86_v15, %v94_v16  ;;  %v195_v16 = vlaneseq }
  0x5e   :  { %v2998_v28 = vcombine.high %v102_v23, %v110_v24 }
  0x60   :  { %1084 = vmatpush1.bf16.msra.mxu0 %v2991_v31  ;;  %1125 = vmatpush1.bf16.msra.mxu1 %v2993_v32  ;;  %v118_v31 = vld [vmem:[#allocation2 + $0x1b8] sm:$0xff] }
  0x61   :  { %1085 = vmatprep.subr.bf16.mxu0 %v3008_v33  ;;  %1126 = vmatprep.subr.bf16.mxu1 %v3010_v34  ;;  %v126_v32 = vld [vmem:[#allocation2 + $0x1f8] sm:$0xff]  ;;  %v2995_v33 = vcombine.low %v101_v21, %v109_v22  ;;  %v2997_v34 = vcombine.low %v102_v23, %v110_v24 }
  0x62   :  { %v3014_v36 = vcombine.high %v118_v31, %v126_v32 }
  0x64   :  { %1086 = vmatpush1.bf16.msra.mxu0 %v3007_v39  ;;  %1127 = vmatpush1.bf16.msra.mxu1 %v3009_v40  ;;  %v134_v39 = vld [vmem:[#allocation2 + $0x238] sm:$0xff] }
  0x65   :  { %1087 = vmatprep.subr.bf16.mxu0 %v3024_v41  ;;  %1128 = vmatprep.subr.bf16.mxu1 %v3026_v42  ;;  %v142_v40 = vld [vmem:[#allocation2 + $0x278] sm:$0xff]  ;;  %v3011_v41 = vcombine.low %v117_v29, %v125_v30  ;;  %v3013_v42 = vcombine.low %v118_v31, %v126_v32 }
  0x68   :  { %1088 = vmatpush1.bf16.msra.mxu0 %v3023_v47  ;;  %1129 = vmatpush1.bf16.msra.mxu1 %v3025_v48  ;;  %v158_v47 = vld [vmem:[#allocation2 + $0x2f8] sm:$0xff]  ;;  %v3027_v48 = vcombine.low %v133_v37, %v141_v38 }
  0x69   :  { %1089 = vmatprep.subr.bf16.mxu0 %v3040_v49  ;;  %1130 = vmatprep.subr.bf16.mxu1 %v3042_v50  ;;  %v3029_v49 = vcombine.low %v134_v39, %v142_v40  ;;  %v3044_v50 = vcombine.high %v149_v44, %v157_v45  ;;  %v3046_v51 = vcombine.high %v150_v46, %v158_v47 }
  0x6c   :  { %1090 = vmatpush1.bf16.msra.mxu0 %v3039_v55  ;;  %1131 = vmatpush1.bf16.msra.mxu1 %v3041_v56  ;;  %v174_v55 = vld [vmem:[#allocation2 + $0x378] sm:$0xff]  ;;  %v3043_v56 = vcombine.low %v149_v44, %v157_v45 }
  0x6d   :  { %1091 = vmatprep.subr.bf16.mxu0 %v3056_v57  ;;  %1132 = vmatprep.subr.bf16.mxu1 %v3058_v58  ;;  %v3045_v57 = vcombine.low %v150_v46, %v158_v47  ;;  %v3060_v58 = vcombine.high %v165_v52, %v173_v53  ;;  %v3062_v59 = vcombine.high %v166_v54, %v174_v55 }
  0x70   :  { %1092 = vmatpush1.bf16.msra.mxu0 %v3055_v63  ;;  %1133 = vmatpush1.bf16.msra.mxu1 %v3057_v1  ;;  %v190_v63 = vld [vmem:[#allocation2 + $0x3f8] sm:$0xff]  ;;  %v3059_v1 = vcombine.low %v165_v52, %v173_v53 }
  0x71   :  { %1093 = vmatprep.subr.bf16.mxu0 %v3072_v2  ;;  %1134 = vmatprep.subr.bf16.mxu1 %v3074_v3  ;;  %v3061_v2 = vcombine.low %v166_v54, %v174_v55  ;;  %v3076_v3 = vcombine.high %v181_v60, %v189_v61  ;;  %v3078_v4 = vcombine.high %v182_v62, %v190_v63 }
  0x72   :  { %v3077_v6 = vcombine.low %v182_v62, %v190_v63 }
  0x74   :  { %1094 = vmatpush1.bf16.msra.mxu0 %v3071_v8  ;;  %1135 = vmatpush1.bf16.msra.mxu1 %v3073_v9 }
  0x75   :  { %1161 = vmatprep.subr.bf16.mxu0 %v2964_v10  ;;  %1202 = vmatprep.subr.bf16.mxu1 %v2966_v11 }
  0x77   :  { %1112 = vmatmul.mubr.bf16.vlgmr.msra.gmra.mrb[8].mxu0 %v3795_v12  ;;  %1153 = vmatmul.mubr.bf16.vlgmr.msra.gmra.mrb[8].mxu1 %v3795_v12 }
  0x78   :  { %1162 = vmatpush1.bf16.msra.mxu0 %v2963_v17  ;;  %1203 = vmatpush1.bf16.msra.mxu1 %v2965_v18  ;;  %v3811_v17 = vshrl.u32 %v195_v16, 7 }
  0x79   :  { %1163 = vmatprep.subr.bf16.mxu0 %v2980_v19  ;;  %1204 = vmatprep.subr.bf16.mxu1 %v2982_v20  ;;  %v191_v19 = vld [vmem:[%s4305_s2] sm:$0xff] }
  0x7a   :  { %1193 = vmatprep.mubr.bf16.mxu0 %v3686_v0  ;;  %1234 = vmatprep.mubr.bf16.mxu1 %v3686_v0  ;;  %v3030_v0 = vcombine.high %v134_v39, %v142_v40  ;;  %v197_v18 = vsub.s32 0, %v3811_v17  ;;  %v205_v20 = vsub.s32 2, %v3811_v17  ;;  %v209_v22 = vsub.s32 3, %v3811_v17 }
  0x7b   :  { %v213_v29 = vsub.s32 4, %v3811_v17  ;;  %v221_v32 = vsub.s32 6, %v3811_v17 }
  0x7c   :  { %1164 = vmatpush1.bf16.msra.mxu0 %v2979_v25  ;;  %1205 = vmatpush1.bf16.msra.mxu1 %v2981_v26  ;;  %v198_v21 = vrot.slane %v191_v19, %v197_v18  ;;  %v206_v23 = vrot.slane %v191_v19, %v205_v20  ;;  %v210_v26 = vrot.slane %v191_v19, %v209_v22 }
  0x7d   :  { %1165 = vmatprep.subr.bf16.mxu0 %v2996_v27  ;;  %1206 = vmatprep.subr.bf16.mxu1 %v2998_v28  ;;  %v214_v37 = vrot.slane %v191_v19, %v213_v29  ;;  %v222_v40 = vrot.slane %v191_v19, %v221_v32 }
  0x80   :  { %1166 = vmatpush1.bf16.msra.mxu0 %v2995_v33  ;;  %1207 = vmatpush1.bf16.msra.mxu1 %v2997_v34  ;;  %v217_v33 = vsub.s32 5, %v3811_v17 }
  0x81   :  { %1167 = vmatprep.subr.bf16.mxu0 %v3012_v35  ;;  %1208 = vmatprep.subr.bf16.mxu1 %v3014_v36  ;;  %v225_v35 = vsub.s32 7, %v3811_v17 }
  0x84   :  { %1168 = vmatpush1.bf16.msra.mxu0 %v3011_v41  ;;  %1209 = vmatpush1.bf16.msra.mxu1 %v3013_v42  ;;  %v218_v41 = vrot.slane %v191_v19, %v217_v33 }
  0x85   :  { %1169 = vmatprep.subr.bf16.mxu0 %v3028_v43  ;;  %1210 = vmatprep.subr.bf16.mxu1 %v3030_v0  ;;  %v226_v43 = vrot.slane %v191_v19, %v225_v35 }
  0x88   :  { %1170 = vmatpush1.bf16.msra.mxu0 %v3027_v48  ;;  %1211 = vmatpush1.bf16.msra.mxu1 %v3029_v49 }
  0x89   :  { %1171 = vmatprep.subr.bf16.mxu0 %v3044_v50  ;;  %1212 = vmatprep.subr.bf16.mxu1 %v3046_v51 }
  0x8c   :  { %1172 = vmatpush1.bf16.msra.mxu0 %v3043_v56  ;;  %1213 = vmatpush1.bf16.msra.mxu1 %v3045_v57 }
  0x8d   :  { %1173 = vmatprep.subr.bf16.mxu0 %v3060_v58  ;;  %1214 = vmatprep.subr.bf16.mxu1 %v3062_v59 }
  0x90   :  { %1174 = vmatpush1.bf16.msra.mxu0 %v3059_v1  ;;  %1215 = vmatpush1.bf16.msra.mxu1 %v3061_v2 }
  0x91   :  { %1175 = vmatprep.subr.bf16.mxu0 %v3076_v3  ;;  %1216 = vmatprep.subr.bf16.mxu1 %v3078_v4 }
  0x94   :  { %1176 = vmatpush1.bf16.msra.mxu0 %v3075_v5  ;;  %1217 = vmatpush1.bf16.msra.mxu1 %v3077_v6 }
  0x97   :  { %1194 = vmatmul.mubr.bf16.vlgmr.msra.gmra.mrb[12].mxu0 %v3795_v12  ;;  %1235 = vmatmul.mubr.bf16.vlgmr.msra.gmra.mrb[12].mxu1 %v3795_v12  ;;  %v201_v12 = vsub.s32 1, %v3811_v17 }
  0x99   :  { %v202_v24 = vrot.slane %v191_v19, %v201_v12 }
 0x10a   :  { %v949_v7 = vpop.f32.mrb[0].mxu0  ;;  %v990_v8 = vpop.f32.mrb[0].mxu1 }
 0x10b   :  { %v951_v9 = vpop.f32.mrb[1].mxu0  ;;  %v992_v10 = vpop.f32.mrb[1].mxu1  ;;  %v3826_v25 = vadd.f32 %v949_v7, %v198_v21  ;;  %v3830_v27 = vadd.f32 %v990_v8, %v206_v23 }
 0x10c   :  { %v953_v11 = vpop.f32.mrb[2].mxu0  ;;  %v994_v14 = vpop.f32.mrb[2].mxu1  ;;  %v3832_v28 = vadd.f32 %v951_v9, %v202_v24  ;;  %v3836_v31 = vadd.f32 %v992_v10, %v210_v26 }
 0x10d   :  { %v954_v13 = vpop.f32.mrb[3].mxu0  ;;  %v995_v15 = vpop.f32.mrb[3].mxu1  ;;  %v1259_v30 = vmin.f32 %v3826_v25, 0.0  ;;  %v1261_v34 = vmin.f32 %v3830_v27, 0.0  ;;  %vm1243_vm0 = vcmp.gt.f32.partialorder %v3826_v25, 0.0  ;;  %vm1245_vm1 = vcmp.gt.f32.partialorder %v3830_v27, 0.0 }
 0x10e   :  { %v1260_v36 = vmin.f32 %v3832_v28, 0.0  ;;  %v1262_v39 = vmin.f32 %v3836_v31, 0.0  ;;  %vm1244_vm2 = vcmp.gt.f32.partialorder %v3832_v28, 0.0  ;;  %vm1246_vm3 = vcmp.gt.f32.partialorder %v3836_v31, 0.0 }
 0x10f   :  { %v1275_v38 = vmul.f32 1.442695, %v1259_v30  ;;  %v1279_v42 = vmul.f32 1.442695, %v1261_v34 }
 0x110   :  { %v1277_v44 = vmul.f32 1.442695, %v1260_v36  ;;  %v1281_v48 = vmul.f32 1.442695, %v1262_v39 }
 0x111   :  { %3549 = vpow2.f32 %v1275_v38 }
 0x112   :  { %3551 = vpow2.f32 %v1279_v42 }
 0x113   :  { %3553 = vpow2.f32 %v1277_v44 }
 0x114   :  { %3555 = vpow2.f32 %v1281_v48 }
 0x11b   :  { %v3550_v2 = vpop.eup %3549 }
 0x11c   :  { %v3552_v3 = vpop.eup %3551  ;;  %v3079_v5 = vadd.f32 -1.0, %v3550_v2 }
 0x11d   :  { %v3554_v4 = vpop.eup %3553  ;;  %v3081_v7 = vadd.f32 -1.0, %v3552_v3 }
 0x11e   :  { %v3556_v6 = vpop.eup %3555  ;;  %v3080_v10 = vadd.f32 -1.0, %v3554_v4  ;;  %v1323_v14 = vsel %vm1243_vm0, %v3826_v25, %v3079_v5  ;;  %vm1399_vm0 = vcmask 1043456  }
 0x11f   :  { %v3082_v15 = vadd.f32 -1.0, %v3556_v6  ;;  %v1325_v21 = vsel %vm1245_vm1, %v3830_v27, %v3081_v7  ;;  %vm1521_vm1 = vcmask 523264  }
 0x120   :  { %v1324_v36 = vsel %vm1244_vm2, %v3832_v28, %v3080_v10  ;;  %vm1488_vm2 = vcmask 261120  }
 0x121   :  { %v1326_v25 = vsel %vm1246_vm3, %v3836_v31, %v3082_v15 }
 0x12a   :  { %v1031_v0 = vpop.f32.mrb[4].mxu0  ;;  %v1072_v46 = vpop.f32.mrb[4].mxu1 }
 0x12b   :  { %v1032_v45 = vadd.f32 %v1031_v0, %v214_v37  ;;  %v1033_v47 = vpop.f32.mrb[5].mxu0  ;;  %v1073_v49 = vadd.f32 %v1072_v46, %v222_v40  ;;  %v1074_v51 = vpop.f32.mrb[5].mxu1 }
 0x12c   :  { %v1034_v50 = vadd.f32 %v1033_v47, %v218_v41  ;;  %v1035_v52 = vpop.f32.mrb[6].mxu0  ;;  %v1075_v54 = vadd.f32 %v1074_v51, %v226_v43  ;;  %v1076_v56 = vpop.f32.mrb[6].mxu1  ;;  %v192_v41 = vld [vmem:[%s4305_s2 + $0x8] sm:$0xff]  ;;  %s3687_s2 = smov 32  }
 0x12d   :  { %v1263_v53 = vmin.f32 %v1032_v45, 0.0  ;;  %v1036_v55 = vpop.f32.mrb[7].mxu0  ;;  %v1265_v57 = vmin.f32 %v1073_v49, 0.0  ;;  %v1077_v59 = vpop.f32.mrb[7].mxu1  ;;  %vm1247_vm4 = vcmp.gt.f32.partialorder %v1032_v45, 0.0  ;;  %vm1249_vm5 = vcmp.gt.f32.partialorder %v1073_v49, 0.0 }
 0x12e   :  { %v1264_v58 = vmin.f32 %v1034_v50, 0.0  ;;  %v1266_v61 = vmin.f32 %v1075_v54, 0.0  ;;  %vm1248_vm6 = vcmp.gt.f32.partialorder %v1034_v50, 0.0  ;;  %vm1250_vm7 = vcmp.gt.f32.partialorder %v1075_v54, 0.0 }
 0x12f   :  { %v1283_v60 = vmul.f32 1.442695, %v1263_v53  ;;  %v1287_v62 = vmul.f32 1.442695, %v1265_v57  ;;  %v230_v42 = vrot.slane %v192_v41, %v197_v18  ;;  %v238_v28 = vrot.slane %v192_v41, %v205_v20 }
 0x130   :  { %v1285_v63 = vmul.f32 1.442695, %v1264_v58  ;;  %v1289_v1 = vmul.f32 1.442695, %v1266_v61  ;;  %v234_v43 = vrot.slane %v192_v41, %v201_v12  ;;  %v242_v0 = vrot.slane %v192_v41, %v209_v22 }
 0x131   :  { %3557 = vpow2.f32 %v1283_v60  ;;  %v250_v15 = vrot.slane %v192_v41, %v217_v33 }
 0x132   :  { %3559 = vpow2.f32 %v1287_v62 }
 0x133   :  { %3561 = vpow2.f32 %v1285_v63 }
 0x134   :  { %3563 = vpow2.f32 %v1289_v1 }
 0x13b   :  { %v3558_v8 = vpop.eup %3557 }
 0x13c   :  { %v3560_v9 = vpop.eup %3559  ;;  %v3083_v11 = vadd.f32 -1.0, %v3558_v8 }
 0x13d   :  { %v3562_v13 = vpop.eup %3561  ;;  %v3085_v16 = vadd.f32 -1.0, %v3560_v9 }
 0x13e   :  { %v3564_v19 = vpop.eup %3563  ;;  %v1327_v23 = vsel %vm1247_vm4, %v1032_v45, %v3083_v11  ;;  %v3084_v24 = vadd.f32 -1.0, %v3562_v13  ;;  %v246_v13 = vrot.slane %v192_v41, %v213_v29 }
 0x13f   :  { %v1339_v26 = vadd.f32 %v1327_v23, %v1323_v14  ;;  %v1329_v30 = vsel %vm1249_vm5, %v1073_v49, %v3085_v16  ;;  %v3086_v34 = vadd.f32 -1.0, %v3564_v19  ;;  %v254_v14 = vrot.slane %v192_v41, %v221_v32 }
 0x140   :  { %v1341_v37 = vadd.f32 %v1329_v30, %v1325_v21  ;;  %v1328_v38 = vsel %vm1248_vm6, %v1034_v50, %v3084_v24  ;;  %v258_v16 = vrot.slane %v192_v41, %v225_v35 }
 0x141   :  { %v1340_v39 = vadd.f32 %v1328_v38, %v1324_v36  ;;  %v1330_v27 = vsel %vm1250_vm7, %v1075_v54, %v3086_v34 }
 0x142   :  { %v1342_v40 = vadd.f32 %v1330_v27, %v1326_v25 }
 0x14a   :  { %v1113_v31 = vpop.f32.mrb[8].mxu0  ;;  %v1154_v45 = vpop.f32.mrb[8].mxu1 }
 0x14b   :  { %v1114_v44 = vadd.f32 %v1113_v31, %v230_v42  ;;  %v1115_v46 = vpop.f32.mrb[9].mxu0  ;;  %v1155_v47 = vadd.f32 %v1154_v45, %v238_v28  ;;  %v1156_v49 = vpop.f32.mrb[9].mxu1 }
 0x14c   :  { %v1116_v48 = vadd.f32 %v1115_v46, %v234_v43  ;;  %v1117_v50 = vpop.f32.mrb[10].mxu0  ;;  %v1157_v52 = vadd.f32 %v1156_v49, %v242_v0  ;;  %v1158_v53 = vpop.f32.mrb[10].mxu1 }
 0x14d   :  { %v1267_v51 = vmin.f32 %v1114_v44, 0.0  ;;  %v1118_v18 = vpop.f32.mrb[11].mxu0  ;;  %v1269_v54 = vmin.f32 %v1155_v47, 0.0  ;;  %v1159_v55 = vpop.f32.mrb[11].mxu1  ;;  %vm1251_vm8 = vcmp.gt.f32.partialorder %v1114_v44, 0.0  ;;  %vm1253_vm9 = vcmp.gt.f32.partialorder %v1155_v47, 0.0 }
 0x14e   :  { %v1268_v20 = vmin.f32 %v1116_v48, 0.0  ;;  %v1270_v12 = vmin.f32 %v1157_v52, 0.0  ;;  %vm1252_vm10 = vcmp.gt.f32.partialorder %v1116_v48, 0.0  ;;  %vm1254_vm11 = vcmp.gt.f32.partialorder %v1157_v52, 0.0 }
 0x14f   :  { %v1291_v56 = vmul.f32 1.442695, %v1267_v51  ;;  %v1295_v57 = vmul.f32 1.442695, %v1269_v54 }
 0x150   :  { %v1293_v58 = vmul.f32 1.442695, %v1268_v20  ;;  %v1297_v22 = vmul.f32 1.442695, %v1270_v12 }
 0x151   :  { %3565 = vpow2.f32 %v1291_v56 }
 0x152   :  { %3567 = vpow2.f32 %v1295_v57 }
 0x153   :  { %3569 = vpow2.f32 %v1293_v58 }
 0x154   :  { %3571 = vpow2.f32 %v1297_v22 }
 0x15b   :  { %v3566_v59 = vpop.eup %3565 }
 0x15c   :  { %v3568_v60 = vpop.eup %3567  ;;  %v3087_v61 = vadd.f32 -1.0, %v3566_v59 }
 0x15d   :  { %v3570_v62 = vpop.eup %3569  ;;  %v3089_v63 = vadd.f32 -1.0, %v3568_v60 }
 0x15e   :  { %v3572_v1 = vpop.eup %3571  ;;  %v1331_v2 = vsel %vm1251_vm8, %v1114_v44, %v3087_v61  ;;  %v3088_v3 = vadd.f32 -1.0, %v3570_v62 }
 0x15f   :  { %v1343_v4 = vadd.f32 %v1339_v26, %v1331_v2  ;;  %v1333_v5 = vsel %vm1253_vm9, %v1155_v47, %v3089_v63  ;;  %v3090_v6 = vadd.f32 -1.0, %v3572_v1 }
 0x160   :  { %v1345_v7 = vadd.f32 %v1341_v37, %v1333_v5  ;;  %v1332_v8 = vsel %vm1252_vm10, %v1116_v48, %v3088_v3 }
 0x161   :  { %v1344_v9 = vadd.f32 %v1340_v39, %v1332_v8  ;;  %v1334_v10 = vsel %vm1254_vm11, %v1157_v52, %v3090_v6  ;;  %vm2322_vm11 = vcmask 15360  }
 0x162   :  { %v1346_v11 = vadd.f32 %v1342_v40, %v1334_v10 }
 0x16a   :  { %v1195_v19 = vpop.f32.mrb[12].mxu0  ;;  %v1236_v23 = vpop.f32.mrb[12].mxu1 }
 0x16b   :  { %v1196_v21 = vadd.f32 %v1195_v19, %v246_v13  ;;  %v1197_v24 = vpop.f32.mrb[13].mxu0  ;;  %v1237_v26 = vadd.f32 %v1236_v23, %v254_v14  ;;  %v1238_v34 = vpop.f32.mrb[13].mxu1 }
 0x16c   :  { %v1198_v30 = vadd.f32 %v1197_v24, %v250_v15  ;;  %v1199_v36 = vpop.f32.mrb[14].mxu0  ;;  %v1239_v38 = vadd.f32 %v1238_v34, %v258_v16  ;;  %v1240_v25 = vpop.f32.mrb[14].mxu1 }
 0x16d   :  { %v1271_v37 = vmin.f32 %v1196_v21, 0.0  ;;  %v1200_v29 = vpop.f32.mrb[15].mxu0  ;;  %v1273_v39 = vmin.f32 %v1237_v26, 0.0  ;;  %v1241_v27 = vpop.f32.mrb[15].mxu1  ;;  %vm1255_vm12 = vcmp.gt.f32.partialorder %v1196_v21, 0.0  ;;  %vm1257_vm13 = vcmp.gt.f32.partialorder %v1237_v26, 0.0 }
 0x16e   :  { %v1272_v32 = vmin.f32 %v1198_v30, 0.0  ;;  %v1274_v33 = vmin.f32 %v1239_v38, 0.0  ;;  %vm1256_vm14 = vcmp.gt.f32.partialorder %v1198_v30, 0.0  ;;  %vm1258_vm15 = vcmp.gt.f32.partialorder %v1239_v38, 0.0  ;;  %v1497_v25 = vld [vmem:[%s4306_s3] sm:$0xff] }
 0x16f   :  { %v1299_v40 = vmul.f32 1.442695, %v1271_v37  ;;  %v1303_v42 = vmul.f32 1.442695, %v1273_v39  ;;  %3225 = vmatprep.mubr.msk.f32.mxu0 %vm1521_vm1, %v1497_v25  ;;  %v1645_v25 = vld [vmem:[%s4307_s4 + $0x10] sm:$0xff] }
 0x170   :  { %v1301_v17 = vmul.f32 1.442695, %v1272_v32  ;;  %v1305_v35 = vmul.f32 1.442695, %v1274_v33  ;;  %v3939_v33 = vld [vmem:[%s4313_s10 + $0x8] sm:$0xff] }
 0x171   :  { %3573 = vpow2.f32 %v1299_v40  ;;  %v3934_v40 = vld [vmem:[%s4313_s10] sm:$0xff] }
 0x172   :  { %3575 = vpow2.f32 %v1303_v42  ;;  %v3945_v42 = vld [vmem:[%s4313_s10 + $0x18] sm:$0xff] }
 0x173   :  { %3577 = vpow2.f32 %v1301_v17  ;;  %v3951_v17 = vld [vmem:[%s4313_s10 + $0x10] sm:$0xff] }
 0x174   :  { %3579 = vpow2.f32 %v1305_v35 }
 0x17b   :  { %v3574_v41 = vpop.eup %3573 }
 0x17c   :  { %v3576_v28 = vpop.eup %3575  ;;  %v3091_v43 = vadd.f32 -1.0, %v3574_v41 }
 0x17d   :  { %v3578_v0 = vpop.eup %3577  ;;  %v3093_v31 = vadd.f32 -1.0, %v3576_v28 }
 0x17e   :  { %v3580_v44 = vpop.eup %3579  ;;  %v1335_v45 = vsel %vm1255_vm12, %v1196_v21, %v3091_v43  ;;  %v3092_v46 = vadd.f32 -1.0, %v3578_v0 }
 0x17f   :  { %v1347_v47 = vadd.f32 %v1343_v4, %v1335_v45  ;;  %v1337_v48 = vsel %vm1257_vm13, %v1237_v26, %v3093_v31  ;;  %v3094_v49 = vadd.f32 -1.0, %v3580_v44 }
 0x180   :  { %v1349_v50 = vadd.f32 %v1345_v7, %v1337_v48  ;;  %v1336_v51 = vsel %vm1256_vm14, %v1198_v30, %v3092_v46 }
 0x181   :  { %v3883_v52 = vmul.f32 0.25, %v1347_v47  ;;  %v1348_v18 = vadd.f32 %v1344_v9, %v1336_v51  ;;  %v1338_v53 = vsel %vm1258_vm15, %v1239_v38, %v3094_v49 }
 0x182   :  { %v1350_v54 = vadd.f32 %v1346_v11, %v1338_v53  ;;  %v3887_v55 = vmul.f32 0.25, %v1349_v50 }
 0x183   :  { %v3885_v20 = vmul.f32 0.25, %v1348_v18  ;;  %v1356_v56 = vrot.slane %v3883_v52, 4 }
 0x184   :  { %v3890_v12 = vmul.f32 0.25, %v1350_v54  ;;  %v1378_v60 = vrot.slane %v3887_v55, 4 }
 0x185   :  { %v3452_v57 = vpack.i.bf16 %v3885_v20, %v3883_v52  ;;  %v1367_v58 = vrot.slane %v3885_v20, 4 }
 0x186   :  { %v3457_v22 = vpack.i.bf16 %v3890_v12, %v3887_v55  ;;  %v1389_v61 = vrot.slane %v3890_v12, 4 }
 0x187   :  { %3453 = vrot.lane.b32.xlu1 %v3452_v57, %s3687_s2  ;;  %3443 = vrot.lane.b32.xlu0 %v3452_v57, %s3688_s16  ;;  %v3447_v59 = vpack.i.bf16 %v1367_v58, %v1356_v56 }
 0x188   :  { %v3482_v23 = vpack.i.bf16 %v1389_v61, %v1378_v60 }
 0x18b   :  { %3458 = vrot.lane.b32.xlu1 %v3457_v22, %s3688_s16  ;;  %3448 = vrot.lane.b32.xlu0 %v3447_v59, %s3685_s28 }
 0x18f   :  { %1435 = vrot.lane.b32.xlu1 %v3887_v55, %s3687_s2  ;;  %1432 = vrot.lane.b32.xlu0 %v1378_v60, %s3685_s28 }
 0x193   :  { %1445 = vrot.lane.b32.xlu1 %v3890_v12, %s3687_s2  ;;  %1442 = vrot.lane.b32.xlu0 %v1389_v61, %s3685_s28 }
 0x197   :  { %3463 = vrot.lane.b32.xlu1 %v3452_v57, %s3685_s28  ;;  %3468 = vrot.lane.b32.xlu0 %v3447_v59, %s3688_s16 }
 0x1f9   :  { %v3454_v62 = vpop.permute.xlu1 %3453  ;;  %v3444_v63 = vpop.permute.xlu0 %3443 }
 0x1fa   :  { %v3445_v1 = vunpack.i.l.bf16 %v3444_v63  ;;  %v3455_v6 = vunpack.i.l.bf16 %v3454_v62  ;;  %v3456_v9 = vunpack.i.h.bf16 %v3454_v62  ;;  %v3446_v10 = vunpack.i.h.bf16 %v3444_v63 }
 0x1fc   :  { %v1448_v2 = vsel %vm1399_vm0, %v1356_v56, %v3445_v1  ;;  %v1450_v21 = vsel %vm1399_vm0, %v1367_v58, %v3446_v10 }
 0x1fd   :  { %v3459_v3 = vpop.permute.xlu1 %3458  ;;  %v3449_v4 = vpop.permute.xlu0 %3448  ;;  %v3472_v5 = vpack.i.bf16 %v1448_v2, %v1356_v56 }
 0x1fe   :  { %v3451_v7 = vunpack.i.h.bf16 %v3449_v4  ;;  %v3450_v8 = vunpack.i.l.bf16 %v3449_v4  ;;  %v3460_v16 = vunpack.i.l.bf16 %v3459_v3  ;;  %v3461_v37 = vunpack.i.h.bf16 %v3459_v3 }
 0x1ff   :  { %3473 = vrot.lane.b32.xlu0 %v3472_v5, %s3687_s2 }
 0x200   :  { %v1449_v11 = vsel %vm1399_vm0, %v3450_v8, %v3455_v6  ;;  %v1451_v19 = vsel %vm1399_vm0, %v3451_v7, %v3456_v9  ;;  %v1452_v30 = vsel %vm1399_vm0, %v1378_v60, %v3460_v16  ;;  %v1454_v32 = vsel %vm1399_vm0, %v1389_v61, %v3461_v37  ;;  %v1643_v37 = vld [vmem:[%s4307_s4] sm:$0xff] }
 0x201   :  { %v1436_v13 = vpop.permute.xlu1 %1435  ;;  %v1433_v14 = vpop.permute.xlu0 %1432  ;;  %v3477_v15 = vpack.i.bf16 %v1367_v58, %v1449_v11  ;;  %v3497_v24 = vpack.i.bf16 %v1451_v19, %v1450_v21  ;;  %v3492_v29 = vpack.i.bf16 %v1452_v30, %v1378_v60 }
 0x202   :  { %v1453_v26 = vsel %vm1399_vm0, %v1433_v14, %v1436_v13 }
 0x203   :  { %3478 = vrot.lane.b32.xlu1 %v3477_v15, %s3687_s2  ;;  %3488 = vrot.lane.b32.xlu0 %v3457_v22, %s3685_s28  ;;  %v3502_v38 = vpack.i.bf16 %v1389_v61, %v1453_v26  ;;  %s3698_s28 = smov 104  }
 0x205   :  { %v1446_v34 = vpop.permute.xlu1 %1445  ;;  %v1443_v36 = vpop.permute.xlu0 %1442 }
 0x206   :  { %v1455_v39 = vsel %vm1399_vm0, %v1443_v36, %v1446_v34  ;;  %v1498_v34 = vld [vmem:[%s4306_s3 + $0x8] sm:$0xff]  ;;  %v1499_v36 = vld [vmem:[%s4306_s3 + $0x10] sm:$0xff] }
 0x207   :  { %3483 = vrot.lane.b32.xlu1 %v3482_v23, %s3688_s16  ;;  %3498 = vrot.lane.b32.xlu0 %v3497_v24, %s3687_s2  ;;  %v3507_v27 = vpack.i.bf16 %v1455_v39, %v1454_v32  ;;  %v1646_v39 = vld [vmem:[%s4307_s4 + $0x18] sm:$0xff] }
 0x208   :  { %v3354_v32 = vpack.c.bf16 %v1646_v39, %v1645_v25 }
 0x209   :  { %v3469_v35 = vpop.permute.xlu0 %3468  ;;  %v3464_v41 = vpop.permute.xlu1 %3463 }
 0x20a   :  { %v3470_v43 = vunpack.i.l.bf16 %v3469_v35  ;;  %v3465_v44 = vunpack.i.l.bf16 %v3464_v41  ;;  %v3471_v48 = vunpack.i.h.bf16 %v3469_v35  ;;  %v3466_v54 = vunpack.i.h.bf16 %v3464_v41  ;;  %v1648_v35 = vld [vmem:[%s4307_s4 + $0x28] sm:$0xff] }
 0x20b   :  { %3493 = vrot.lane.b32.xlu1 %v3492_v29, %s3687_s2  ;;  %3503 = vrot.lane.b32.xlu0 %v3502_v38, %s3687_s2  ;;  %v1644_v38 = vld [vmem:[%s4307_s4 + $0x8] sm:$0xff] }
 0x20c   :  { %v1400_v49 = vsel %vm1399_vm0, %v3883_v52, %v3470_v43  ;;  %v1402_v60 = vsel %vm1399_vm0, %v3885_v20, %v3471_v48  ;;  %v3350_v29 = vpack.c.bf16 %v1644_v38, %v1643_v37  ;;  %v1650_v43 = vld [vmem:[%s4307_s4 + $0x38] sm:$0xff]  ;;  %v3694_v48 = vmov 6  }
 0x20e   :  { %3351 = vmatprep.subr.bf16.mxu1 %v3350_v29 }
 0x20f   :  { %3508 = vrot.lane.b32.xlu1 %v3507_v27, %s3687_s2  ;;  %1503 = vperm.xlu0 %3512, %v3934_v40   ;;  %v1647_v27 = vld [vmem:[%s4307_s4 + $0x20] sm:$0xff] }
 0x210   :  { %3353 = vmatpush3.bf16.msra.mxu1 %v3350_v29  ;;  %v3358_v41 = vpack.c.bf16 %v1648_v35, %v1647_v27 }
 0x211   :  { %3355 = vmatprep.subr.bf16.mxu1 %v3354_v32 }
 0x213   :  { %1508 = vperm.xlu1 %3513, %v3939_v33   ;;  %1518 = vperm.xlu0 %3512, %v3945_v42  }
 0x214   :  { %3357 = vmatpush3.bf16.msra.mxu1 %v3354_v32 }
 0x215   :  { %3359 = vmatprep.subr.bf16.mxu1 %v3358_v41 }
 0x217   :  { %1513 = vperm.xlu1 %3513, %v3951_v17  }
 0x218   :  { %3361 = vmatpush3.bf16.msra.mxu1 %v3358_v41 }
 0x271   :  { %v3474_v28 = vpop.permute.xlu0 %3473 }
 0x272   :  { %v3475_v0 = vunpack.i.l.bf16 %v3474_v28  ;;  %v3476_v31 = vunpack.i.h.bf16 %v3474_v28  ;;  %v1649_v28 = vld [vmem:[%s4307_s4 + $0x30] sm:$0xff]  ;;  %s3696_s4 = smov 120  }
 0x274   :  { %v1401_v50 = vsel %vm1399_vm0, %v3465_v44, %v3475_v0  ;;  %v1489_v18 = vsel %vm1488_vm2, %v1400_v49, %v3476_v31  ;;  %v3362_v0 = vpack.c.bf16 %v1650_v43, %v1649_v28  ;;  %v3689_v31 = vmov 3  }
 0x275   :  { %v3479_v45 = vpop.permute.xlu1 %3478  ;;  %v3489_v46 = vpop.permute.xlu0 %3488  ;;  %3514 = vset.pattern.permute.xlu1 %v3689_v31  ;;  %3515 = vset.pattern.permute.xlu0 %v3689_v31  ;;  %v3690_v44 = vmov 4   ;;  %v3695_v49 = vmov 2  }
 0x276   :  { %v3480_v47 = vunpack.i.l.bf16 %v3479_v45  ;;  %v3481_v51 = vunpack.i.h.bf16 %v3479_v45  ;;  %v3490_v4 = vunpack.i.l.bf16 %v3489_v46  ;;  %v3491_v13 = vunpack.i.h.bf16 %v3489_v46  ;;  %3363 = vmatprep.subr.bf16.mxu1 %v3362_v0  ;;  %1769 = vperm.xlu1 %3514, %v3934_v40  }
 0x277   :  { %3365 = vmatpush3.bf16.msra.mxu1 %v3362_v0  ;;  %1773 = vperm.xlu0 %3515, %v3939_v33   ;;  %v3691_v45 = vmov 5   ;;  %v3692_v46 = vmov 8  }
 0x278   :  { %v1490_v53 = vsel %vm1488_vm2, %v1401_v50, %v3480_v47  ;;  %v1403_v52 = vsel %vm1399_vm0, %v3466_v54, %v3481_v51  ;;  %v3693_v47 = vmov 7  }
 0x279   :  { %v3484_v56 = vpop.permute.xlu1 %3483  ;;  %v3499_v57 = vpop.permute.xlu0 %3498  ;;  %v3334_v58 = vpack.c.bf16 %v1490_v53, %v1489_v18 }
 0x27a   :  { %v3501_v22 = vunpack.i.h.bf16 %v3499_v57  ;;  %v3500_v59 = vunpack.i.l.bf16 %v3499_v57  ;;  %v3485_v61 = vunpack.i.l.bf16 %v3484_v56  ;;  %v3486_v8 = vunpack.i.h.bf16 %v3484_v56  ;;  %3516 = vset.pattern.permute.xlu1 %v3690_v44 }
 0x27b   :  { %3335 = vmatprep.subr.bf16.mxu0 %v3334_v58  ;;  %1777 = vperm.xlu0 %3515, %v3951_v17  }
 0x27c   :  { %3337 = vmatpush3.bf16.msra.mxu0 %v3334_v58  ;;  %v1491_v62 = vsel %vm1488_vm2, %v1402_v60, %v3500_v59  ;;  %v1492_v63 = vsel %vm1488_vm2, %v1403_v52, %v3501_v22  ;;  %v1404_v20 = vsel %vm1399_vm0, %v3887_v55, %v3485_v61  ;;  %v1406_v24 = vsel %vm1399_vm0, %v3890_v12, %v3486_v8  ;;  %v1500_v12 = vld [vmem:[%s4306_s3 + $0x18] sm:$0xff] }
 0x27d   :  { %v3494_v1 = vpop.permute.xlu1 %3493  ;;  %v3504_v2 = vpop.permute.xlu0 %3503  ;;  %v3338_v3 = vpack.c.bf16 %v1492_v63, %v1491_v62  ;;  %1809 = vperm.xlu1 %3516, %v3934_v40  }
 0x27e   :  { %v3496_v5 = vunpack.i.h.bf16 %v3494_v1  ;;  %v3495_v6 = vunpack.i.l.bf16 %v3494_v1  ;;  %v3505_v7 = vunpack.i.l.bf16 %v3504_v2  ;;  %v3506_v9 = vunpack.i.h.bf16 %v3504_v2 }
 0x27f   :  { %3339 = vmatprep.subr.bf16.mxu0 %v3338_v3  ;;  %3520 = vset.pattern.permute.xlu0 %v3690_v44 }
 0x280   :  { %3341 = vmatpush3.bf16.msra.mxu0 %v3338_v3  ;;  %v1405_v10 = vsel %vm1399_vm0, %v3490_v4, %v3495_v6  ;;  %v1493_v11 = vsel %vm1488_vm2, %v1404_v20, %v3496_v5  ;;  %v1407_v23 = vsel %vm1399_vm0, %v3491_v13, %v3506_v9  ;;  %1821 = vperm.xlu0 %3520, %v3945_v42   ;;  %vm3711_vm0 = vmmov 0  }
 0x281   :  { %v3509_v14 = vpop.permute.xlu1 %3508  ;;  %v1494_v15 = vsel %vm1488_vm2, %v1405_v10, %v3505_v7  ;;  %1813 = vperm.xlu1 %3516, %v3939_v33  }
 0x282   :  { %v3511_v16 = vunpack.i.h.bf16 %v3509_v14  ;;  %v3510_v19 = vunpack.i.l.bf16 %v3509_v14  ;;  %v3342_v21 = vpack.c.bf16 %v1494_v15, %v1493_v11 }
 0x284   :  { %3343 = vmatprep.subr.bf16.mxu0 %v3342_v21  ;;  %v1495_v55 = vsel %vm1488_vm2, %v1406_v24, %v3510_v19  ;;  %v1496_v26 = vsel %vm1488_vm2, %v1407_v23, %v3511_v16  ;;  %3521 = vset.pattern.permute.xlu0 %v3691_v45 }
 0x285   :  { %3345 = vmatpush3.bf16.msra.mxu0 %v3342_v21  ;;  %v3346_v30 = vpack.c.bf16 %v1496_v26, %v1495_v55  ;;  %3517 = vset.pattern.permute.xlu1 %v3689_v31 }
 0x286   :  { %1781 = vperm.xlu1 %3517, %v3945_v42   ;;  %1849 = vperm.xlu0 %3521, %v3934_v40  }
 0x287   :  { %3347 = vmatprep.subr.bf16.mxu0 %v3346_v30 }
 0x289   :  { %3349 = vmatpush3.bf16.msra.mxu0 %v3346_v30 }
 0x28a   :  { %3518 = vset.pattern.permute.xlu1 %v3691_v45  ;;  %1857 = vperm.xlu0 %3521, %v3951_v17  }
 0x28b   :  { %1853 = vperm.xlu1 %3518, %v3939_v33  }
 0x28c   :  { %3226 = vmatmul.mubr.msk.f32.vlgmr.msra.gmra.mrb[16].mxu0 %vm1521_vm1, %v1498_v34 }
 0x28d   :  { %3228 = vmatprep.mubr.msk.f32.mxu0 %vm1521_vm1, %v1499_v36 }
 0x28e   :  { %3526 = vset.pattern.permute.xlu0 %v3692_v46  ;;  %v1504_v50 = vpop.permute.xlu0 %1503 }
 0x28f   :  { %3519 = vset.pattern.permute.xlu1 %v3690_v44  ;;  %1969 = vperm.xlu0 %3526, %v3934_v40  }
 0x290   :  { %3229 = vmatmul.mubr.msk.f32.gmra.mrb[18].mxu0 %vm1521_vm1, %v1500_v12  ;;  %1817 = vperm.xlu1 %3519, %v3951_v17  }
 0x292   :  { %v1509_v51 = vpop.permute.xlu1 %1508  ;;  %v1519_v22 = vpop.permute.xlu0 %1518 }
 0x293   :  { %3527 = vset.pattern.permute.xlu0 %v3693_v47 }
 0x294   :  { %3522 = vset.pattern.permute.xlu1 %v3694_v48  ;;  %1933 = vperm.xlu0 %3527, %v3939_v33  }
 0x295   :  { %1889 = vperm.xlu1 %3522, %v3934_v40  }
 0x296   :  { %v1514_v61 = vpop.permute.xlu1 %1513 }
 0x298   :  { %1941 = vperm.xlu0 %3527, %v3945_v42  }
 0x299   :  { %1893 = vperm.xlu1 %3522, %v3939_v33  }
 0x29c   :  { %3531 = vset.pattern.permute.xlu0 %v3695_v49 }
 0x29d   :  { %3523 = vset.pattern.permute.xlu1 %v3691_v45  ;;  %1749 = vperm.xlu0 %3531, %v3934_v40  }
 0x29e   :  { %1861 = vperm.xlu1 %3523, %v3945_v42  }
 0x2a1   :  { %1761 = vperm.xlu0 %3531, %v3945_v42  }
 0x2a2   :  { %3524 = vset.pattern.permute.xlu1 %v3693_v47 }
 0x2a3   :  { %1929 = vperm.xlu1 %3524, %v3934_v40  }
 0x2a7   :  { %3525 = vset.pattern.permute.xlu1 %v3694_v48 }
 0x2a8   :  { %1897 = vperm.xlu1 %3525, %v3951_v17  }
 0x2ac   :  { %1901 = vperm.xlu1 %3525, %v3945_v42  }
 0x2b0   :  { %3528 = vset.pattern.permute.xlu1 %v3692_v46 }
 0x2b1   :  { %1973 = vperm.xlu1 %3528, %v3939_v33  }
 0x2b5   :  { %3529 = vset.pattern.permute.xlu1 %v3693_v47 }
 0x2b6   :  { %1937 = vperm.xlu1 %3529, %v3951_v17  }
 0x2ba   :  { %3530 = vset.pattern.permute.xlu1 %v3692_v46 }
 0x2bb   :  { %1977 = vperm.xlu1 %3530, %v3951_v17  }
 0x2bf   :  { %1981 = vperm.xlu1 %3530, %v3945_v42  }
 0x2c3   :  { %3532 = vset.pattern.permute.xlu1 %v3695_v49 }
 0x2c4   :  { %1753 = vperm.xlu1 %3532, %v3939_v33  }
 0x2c8   :  { %1757 = vperm.xlu1 %3532, %v3951_v17  }
 0x2f5   :  { %v1770_v21 = vpop.permute.xlu1 %1769 }
 0x2f6   :  { %v1774_v34 = vpop.permute.xlu0 %1773 }
 0x2fa   :  { %v1778_v12 = vpop.permute.xlu0 %1777 }
 0x2fc   :  { %v1810_v23 = vpop.permute.xlu1 %1809 }
 0x2ff   :  { %v1822_v38 = vpop.permute.xlu0 %1821 }
 0x300   :  { %v1814_v24 = vpop.permute.xlu1 %1813 }
 0x305   :  { %v1782_v55 = vpop.permute.xlu1 %1781  ;;  %v1850_v25 = vpop.permute.xlu0 %1849 }
 0x309   :  { %v1858_v28 = vpop.permute.xlu0 %1857 }
 0x30a   :  { %v1854_v26 = vpop.permute.xlu1 %1853 }
 0x30e   :  { %v1970_v47 = vpop.permute.xlu0 %1969 }
 0x30f   :  { %v1818_v30 = vpop.permute.xlu1 %1817 }
 0x314   :  { %v1890_v36 = vpop.permute.xlu1 %1889 }
 0x318   :  { %v1894_v37 = vpop.permute.xlu1 %1893 }
 0x31d   :  { %v1862_v29 = vpop.permute.xlu1 %1861 }
 0x322   :  { %v1930_v35 = vpop.permute.xlu1 %1929 }
 0x327   :  { %v1898_v45 = vpop.permute.xlu1 %1897 }
 0x35f   :  { %v3227_v18 = vpop.f32.mrb[16].mxu0 }
 0x360   :  { %v1606_v53 = vadd.f32 %v3227_v18, %v1509_v51  ;;  %v1600_v54 = vpop.f32.mrb[17].mxu0  ;;  %v1934_v18 = vpop.permute.xlu0 %1933 }
 0x361   :  { %v1601_v56 = vadd.f32 %v1600_v54, %v1504_v50  ;;  %v1902_v50 = vpop.permute.xlu1 %1901 }
 0x362   :  { %v1624_v57 = vmin.f32 %v1606_v53, 0.0  ;;  %vm1620_vm4 = vcmp.gt.f32.partialorder %v1606_v53, 0.0 }
 0x363   :  { %v1623_v58 = vmin.f32 %v1601_v56, 0.0  ;;  %v3230_v59 = vpop.f32.mrb[18].mxu0  ;;  %vm1619_vm3 = vcmp.gt.f32.partialorder %v1601_v56, 0.0 }
 0x364   :  { %v1629_v60 = vmul.f32 1.442695, %v1624_v57  ;;  %v1616_v52 = vadd.f32 %v3230_v59, %v1519_v22  ;;  %v1610_v62 = vpop.f32.mrb[19].mxu0 }
 0x365   :  { %v1627_v63 = vmul.f32 1.442695, %v1623_v58  ;;  %v1611_v1 = vadd.f32 %v1610_v62, %v1514_v61 }
 0x366   :  { %3581 = vpow2.f32 %v1629_v60  ;;  %v1626_v2 = vmin.f32 %v1616_v52, 0.0  ;;  %vm1622_vm6 = vcmp.gt.f32.partialorder %v1616_v52, 0.0 }
 0x367   :  { %3583 = vpow2.f32 %v1627_v63  ;;  %v1625_v3 = vmin.f32 %v1611_v1, 0.0  ;;  %vm1621_vm5 = vcmp.gt.f32.partialorder %v1611_v1, 0.0 }
 0x368   :  { %v1633_v4 = vmul.f32 1.442695, %v1626_v2 }
 0x369   :  { %v1631_v5 = vmul.f32 1.442695, %v1625_v3 }
 0x36a   :  { %3585 = vpow2.f32 %v1633_v4  ;;  %v1942_v4 = vpop.permute.xlu0 %1941 }
 0x36b   :  { %3587 = vpow2.f32 %v1631_v5  ;;  %v2008_v5 = vld [vmem:[%s4308_s5] sm:$0xff] }
 0x36c   :  { %3261 = vmatprep.mubr.msk.f32.mxu0 %vm1488_vm2, %v2008_v5 }
 0x370   :  { %v3582_v6 = vpop.eup %3581 }
 0x371   :  { %v3584_v7 = vpop.eup %3583  ;;  %v3100_v8 = vadd.f32 -1.0, %v3582_v6 }
 0x372   :  { %v3099_v9 = vadd.f32 -1.0, %v3584_v7 }
 0x373   :  { %v1640_v13 = vsel %vm1620_vm4, %v1606_v53, %v3100_v8 }
 0x374   :  { %v3586_v20 = vpop.eup %3585  ;;  %v1639_v10 = vsel %vm1619_vm3, %v1601_v56, %v3099_v9  ;;  %v1974_v56 = vpop.permute.xlu1 %1973 }
 0x375   :  { %v3588_v11 = vpop.eup %3587  ;;  %3247 = vmatprep.mubr.msk.f32.mxu1 %vm1521_vm1, %v1639_v10  ;;  %v3102_v14 = vadd.f32 -1.0, %v3586_v20  ;;  %v3701_v10 = vmov 1  }
 0x376   :  { %3248 = vmatmul.mubr.msk.f32.vlgmr.msra.gmra.mrb[16].mxu1 %vm1521_vm1, %v1640_v13  ;;  %v3101_v15 = vadd.f32 -1.0, %v3588_v11  ;;  %3534 = vset.pattern.permute.xlu0 %v3701_v10  ;;  %v1750_v11 = vpop.permute.xlu0 %1749 }
 0x377   :  { %v1642_v19 = vsel %vm1622_vm6, %v1616_v52, %v3102_v14  ;;  %3533 = vset.pattern.permute.xlu1 %v3701_v10  ;;  %v2010_v10 = vld [vmem:[%s4308_s5 + $0x10] sm:$0xff] }
 0x378   :  { %v1641_v16 = vsel %vm1621_vm5, %v1611_v1, %v3101_v15  ;;  %v1938_v52 = vpop.permute.xlu1 %1937 }
 0x379   :  { %3250 = vmatprep.mubr.msk.f32.mxu1 %vm1521_vm1, %v1641_v16 }
 0x37a   :  { %3251 = vmatmul.mubr.msk.f32.gmra.mrb[18].mxu1 %vm1521_vm1, %v1642_v19  ;;  %v1762_v14 = vpop.permute.xlu0 %1761 }
 0x37c   :  { %v1978_v2 = vpop.permute.xlu1 %1977 }
 0x380   :  { %v1982_v8 = vpop.permute.xlu1 %1981 }
 0x384   :  { %v1754_v13 = vpop.permute.xlu1 %1753 }
 0x388   :  { %v1758_v15 = vpop.permute.xlu1 %1757 }
 0x449   :  { %v4043_v39 = vpop.f32.mrb[16].mxu1 }
 0x44a   :  { %v4045_v32 = vpop.f32.mrb[17].mxu1  ;;  %v1785_v27 = vmul.f32 %v4043_v39, %v1774_v34  ;;  %v1825_v31 = vmul.f32 %v4043_v39, %v1814_v24  ;;  %v1865_v46 = vmul.f32 %v4043_v39, %v1854_v26  ;;  %v1905_v49 = vmul.f32 %v4043_v39, %v1894_v37 }
 0x44b   :  { %v1784_v41 = vmul.f32 %v1770_v21, %v4045_v32  ;;  %v1824_v44 = vmul.f32 %v1810_v23, %v4045_v32  ;;  %v1864_v48 = vmul.f32 %v1850_v25, %v4045_v32  ;;  %v1904_v51 = vmul.f32 %v1890_v36, %v4045_v32 }
 0x44c   :  { %1794 = vrot.lane.b32.xlu0 %v1785_v27, %s3696_s4  ;;  %v1945_v53 = vmul.f32 %v4043_v39, %v1934_v18  ;;  %v1944_v54 = vmul.f32 %v1930_v35, %v4045_v32  ;;  %v1985_v57 = vmul.f32 %v4043_v39, %v1974_v56  ;;  %v1984_v58 = vmul.f32 %v1970_v47, %v4045_v32 }
 0x44d   :  { %1792 = vrot.lane.b32.xlu1 %v1784_v41, %s3696_s4  ;;  %v4051_v43 = vpop.f32.mrb[18].mxu1 }
 0x44e   :  { %v4053_v0 = vpop.f32.mrb[19].mxu1  ;;  %v1787_v22 = vmul.f32 %v4051_v43, %v1782_v55  ;;  %v1827_v60 = vmul.f32 %v4051_v43, %v1822_v38  ;;  %v1867_v62 = vmul.f32 %v4051_v43, %v1862_v29  ;;  %v1907_v1 = vmul.f32 %v4051_v43, %v1902_v50 }
 0x44f   :  { %v1786_v59 = vmul.f32 %v1778_v12, %v4053_v0  ;;  %v1826_v61 = vmul.f32 %v1818_v30, %v4053_v0  ;;  %v1866_v63 = vmul.f32 %v1858_v28, %v4053_v0  ;;  %v1906_v3 = vmul.f32 %v1898_v45, %v4053_v0 }
 0x450   :  { %1834 = vrot.lane.b32.xlu0 %v1825_v31, %s3697_s27  ;;  %v1947_v6 = vmul.f32 %v4051_v43, %v1942_v4  ;;  %v1946_v7 = vmul.f32 %v1938_v52, %v4053_v0  ;;  %v1987_v9 = vmul.f32 %v4051_v43, %v1982_v8  ;;  %v1986_v20 = vmul.f32 %v1978_v2, %v4053_v0 }
 0x451   :  { %1832 = vrot.lane.b32.xlu1 %v1824_v44, %s3697_s27  ;;  %v1765_v55 = vmul.f32 %v4043_v39, %v1754_v13  ;;  %v1764_v30 = vmul.f32 %v1750_v11, %v4045_v32  ;;  %v2011_v11 = vld [vmem:[%s4308_s5 + $0x18] sm:$0xff] }
 0x454   :  { %1874 = vrot.lane.b32.xlu0 %v1865_v46, %s3698_s28 }
 0x455   :  { %1872 = vrot.lane.b32.xlu1 %v1864_v48, %s3698_s28 }
 0x458   :  { %1914 = vrot.lane.b32.xlu0 %v1905_v49, %s3688_s16 }
 0x459   :  { %1912 = vrot.lane.b32.xlu1 %v1904_v51, %s3688_s16 }
 0x45c   :  { %1954 = vrot.lane.b32.xlu0 %v1945_v53, %s3699_s29 }
 0x45d   :  { %1952 = vrot.lane.b32.xlu1 %v1944_v54, %s3699_s29  ;;  %v1767_v54 = vmul.f32 %v4051_v43, %v1762_v14 }
 0x460   :  { %1994 = vrot.lane.b32.xlu0 %v1985_v57, %s3700_s30  ;;  %v1766_v57 = vmul.f32 %v1758_v15, %v4053_v0  ;;  %v2009_v0 = vld [vmem:[%s4308_s5 + $0x8] sm:$0xff]  ;;  %s3702_s5 = smov 126  }
 0x461   :  { %1992 = vrot.lane.b32.xlu1 %v1984_v58, %s3700_s30 }
 0x464   :  { %1798 = vrot.lane.b32.xlu0 %v1787_v22, %s3696_s4 }
 0x465   :  { %1796 = vrot.lane.b32.xlu1 %v1786_v59, %s3696_s4 }
 0x468   :  { %1838 = vrot.lane.b32.xlu0 %v1827_v60, %s3697_s27 }
 0x469   :  { %1836 = vrot.lane.b32.xlu1 %v1826_v61, %s3697_s27 }
 0x46c   :  { %1878 = vrot.lane.b32.xlu0 %v1867_v62, %s3698_s28 }
 0x46d   :  { %1876 = vrot.lane.b32.xlu1 %v1866_v63, %s3698_s28 }
 0x470   :  { %1918 = vrot.lane.b32.xlu0 %v1907_v1, %s3688_s16 }
 0x471   :  { %1916 = vrot.lane.b32.xlu1 %v1906_v3, %s3688_s16 }
 0x474   :  { %1958 = vrot.lane.b32.xlu0 %v1947_v6, %s3699_s29 }
 0x475   :  { %1956 = vrot.lane.b32.xlu1 %v1946_v7, %s3699_s29 }
 0x478   :  { %1998 = vrot.lane.b32.xlu0 %v1987_v9, %s3700_s30 }
 0x479   :  { %1996 = vrot.lane.b32.xlu1 %v1986_v20, %s3700_s30 }
 0x47c   :  { %2017 = vperm.xlu0 %3534, %v3939_v33  }
 0x47d   :  { %2013 = vperm.xlu1 %3533, %v3934_v40  }
 0x481   :  { %2021 = vperm.xlu1 %3533, %v3951_v17  }
 0x485   :  { %2025 = vperm.xlu1 %3533, %v3945_v42  }
 0x4be   :  { %v1795_v16 = vpop.permute.xlu0 %1794 }
 0x4bf   :  { %v1793_v19 = vpop.permute.xlu1 %1792  ;;  %v1805_v34 = vadd.f32 %v1795_v16, %v1765_v55 }
 0x4c0   :  { %v1804_v36 = vadd.f32 %v1793_v19, %v1764_v30 }
 0x4c2   :  { %v1835_v21 = vpop.permute.xlu0 %1834 }
 0x4c3   :  { %v1833_v23 = vpop.permute.xlu1 %1832  ;;  %v1845_v37 = vadd.f32 %v1835_v21, %v1805_v34 }
 0x4c4   :  { %v1844_v29 = vadd.f32 %v1833_v23, %v1804_v36 }
 0x4c6   :  { %v1875_v24 = vpop.permute.xlu0 %1874 }
 0x4c7   :  { %v1873_v26 = vpop.permute.xlu1 %1872  ;;  %v1885_v25 = vadd.f32 %v1875_v24, %v1845_v37 }
 0x4c8   :  { %v1884_v27 = vadd.f32 %v1873_v26, %v1844_v29 }
 0x4ca   :  { %v1915_v12 = vpop.permute.xlu0 %1914 }
 0x4cb   :  { %v1913_v38 = vpop.permute.xlu1 %1912  ;;  %v1925_v41 = vadd.f32 %v1915_v12, %v1885_v25 }
 0x4cc   :  { %v1924_v31 = vadd.f32 %v1913_v38, %v1884_v27 }
 0x4ce   :  { %v1955_v35 = vpop.permute.xlu0 %1954 }
 0x4cf   :  { %v1953_v28 = vpop.permute.xlu1 %1952  ;;  %v1965_v44 = vadd.f32 %v1955_v35, %v1925_v41 }
 0x4d0   :  { %v1964_v45 = vadd.f32 %v1953_v28, %v1924_v31 }
 0x4d2   :  { %v1995_v46 = vpop.permute.xlu0 %1994 }
 0x4d3   :  { %v2005_v47 = vadd.f32 %v1995_v46, %v1965_v44  ;;  %v1993_v39 = vpop.permute.xlu1 %1992 }
 0x4d4   :  { %v2004_v48 = vadd.f32 %v1993_v39, %v1964_v45 }
 0x4d6   :  { %v3366_v49 = vpack.c.bf16 %v2005_v47, %v2004_v48  ;;  %v1799_v32 = vpop.permute.xlu0 %1798 }
 0x4d7   :  { %v1797_v50 = vpop.permute.xlu1 %1796  ;;  %v1807_v58 = vadd.f32 %v1799_v32, %v1767_v54  ;;  %v3707_v54 = vmov 11  }
 0x4d8   :  { %3367 = vmatprep.subr.bf16.mxu0 %v3366_v49  ;;  %v1806_v22 = vadd.f32 %v1797_v50, %v1766_v57 }
 0x4d9   :  { %3369 = vmatpush3.bf16.msra.mxu0 %v3366_v49 }
 0x4da   :  { %v1839_v51 = vpop.permute.xlu0 %1838 }
 0x4db   :  { %v1837_v18 = vpop.permute.xlu1 %1836  ;;  %v1847_v60 = vadd.f32 %v1839_v51, %v1807_v58  ;;  %v2205_v51 = vld [vmem:[%s4309_s6] sm:$0xff] }
 0x4dc   :  { %v1846_v52 = vadd.f32 %v1837_v18, %v1806_v22  ;;  %3275 = vmatprep.mubr.msk.f32.mxu1 %vm1488_vm2, %v2205_v51  ;;  %v3705_v18 = vmov 9  }
 0x4dd   :  { %3536 = vset.pattern.permute.xlu1 %v3705_v18  ;;  %3535 = vset.pattern.permute.xlu0 %v3705_v18 }
 0x4de   :  { %v1879_v53 = vpop.permute.xlu0 %1878 }
 0x4df   :  { %v1877_v56 = vpop.permute.xlu1 %1876  ;;  %v1887_v62 = vadd.f32 %v1879_v53, %v1847_v60  ;;  %v3706_v53 = vmov 10  }
 0x4e0   :  { %v1886_v63 = vadd.f32 %v1877_v56, %v1846_v52 }
 0x4e2   :  { %v1919_v59 = vpop.permute.xlu0 %1918 }
 0x4e3   :  { %v1917_v61 = vpop.permute.xlu1 %1916  ;;  %v1927_v2 = vadd.f32 %v1919_v59, %v1887_v62 }
 0x4e4   :  { %v1926_v4 = vadd.f32 %v1917_v61, %v1886_v63 }
 0x4e6   :  { %v1959_v1 = vpop.permute.xlu0 %1958 }
 0x4e7   :  { %v1957_v3 = vpop.permute.xlu1 %1956  ;;  %v1967_v5 = vadd.f32 %v1959_v1, %v1927_v2 }
 0x4e8   :  { %v1966_v6 = vadd.f32 %v1957_v3, %v1926_v4 }
 0x4ea   :  { %v1999_v7 = vpop.permute.xlu0 %1998 }
 0x4eb   :  { %v2007_v8 = vadd.f32 %v1999_v7, %v1967_v5  ;;  %v1997_v43 = vpop.permute.xlu1 %1996 }
 0x4ec   :  { %v2006_v9 = vadd.f32 %v1997_v43, %v1966_v6 }
 0x4ee   :  { %v3370_v20 = vpack.c.bf16 %v2007_v8, %v2006_v9 }
 0x4f0   :  { %3371 = vmatprep.subr.bf16.mxu0 %v3370_v20 }
 0x4f1   :  { %3373 = vmatpush3.bf16.msra.mxu0 %v3370_v20 }
 0x4f4   :  { %3262 = vmatmul.mubr.msk.f32.vlgmr.msra.gmra.mrb[20].mxu0 %vm1488_vm2, %v2009_v0 }
 0x4f5   :  { %3264 = vmatprep.mubr.msk.f32.mxu0 %vm1488_vm2, %v2010_v10 }
 0x4f8   :  { %3265 = vmatmul.mubr.msk.f32.gmra.mrb[22].mxu0 %vm1488_vm2, %v2011_v11 }
 0x4fb   :  { %v2018_v15 = vpop.permute.xlu0 %2017 }
 0x4fc   :  { %v2014_v13 = vpop.permute.xlu1 %2013 }
 0x500   :  { %v2022_v14 = vpop.permute.xlu1 %2021 }
 0x504   :  { %v2026_v55 = vpop.permute.xlu1 %2025 }
 0x5c7   :  { %v3263_v16 = vpop.f32.mrb[20].mxu0 }
 0x5c8   :  { %v2112_v19 = vadd.f32 %v3263_v16, %v2018_v15  ;;  %v2106_v21 = vpop.f32.mrb[21].mxu0 }
 0x5c9   :  { %v2107_v23 = vadd.f32 %v2106_v21, %v2014_v13 }
 0x5ca   :  { %v2130_v24 = vmin.f32 %v2112_v19, 0.0  ;;  %vm2126_vm7 = vcmp.gt.f32.partialorder %v2112_v19, 0.0 }
 0x5cb   :  { %v2129_v26 = vmin.f32 %v2107_v23, 0.0  ;;  %v3266_v30 = vpop.f32.mrb[22].mxu0  ;;  %vm2125_vm8 = vcmp.gt.f32.partialorder %v2107_v23, 0.0 }
 0x5cc   :  { %v2135_v34 = vmul.f32 1.442695, %v2130_v24  ;;  %v2122_v36 = vadd.f32 %v3266_v30, %v2026_v55  ;;  %v2116_v12 = vpop.f32.mrb[23].mxu0  ;;  %v2207_v24 = vld [vmem:[%s4309_s6 + $0x10] sm:$0xff]  ;;  %v2208_v55 = vld [vmem:[%s4309_s6 + $0x18] sm:$0xff] }
 0x5cd   :  { %v2133_v37 = vmul.f32 1.442695, %v2129_v26  ;;  %v2117_v38 = vadd.f32 %v2116_v12, %v2022_v14 }
 0x5ce   :  { %3589 = vpow2.f32 %v2135_v34  ;;  %v2132_v29 = vmin.f32 %v2122_v36, 0.0  ;;  %vm2128_vm9 = vcmp.gt.f32.partialorder %v2122_v36, 0.0 }
 0x5cf   :  { %3591 = vpow2.f32 %v2133_v37  ;;  %v2131_v25 = vmin.f32 %v2117_v38, 0.0  ;;  %vm2127_vm10 = vcmp.gt.f32.partialorder %v2117_v38, 0.0 }
 0x5d0   :  { %v2139_v27 = vmul.f32 1.442695, %v2132_v29 }
 0x5d1   :  { %v2137_v35 = vmul.f32 1.442695, %v2131_v25 }
 0x5d2   :  { %3593 = vpow2.f32 %v2139_v27 }
 0x5d3   :  { %3595 = vpow2.f32 %v2137_v35 }
 0x5d8   :  { %v3590_v41 = vpop.eup %3589 }
 0x5d9   :  { %v3592_v28 = vpop.eup %3591  ;;  %v3112_v31 = vadd.f32 -1.0, %v3590_v41 }
 0x5da   :  { %v3111_v44 = vadd.f32 -1.0, %v3592_v28 }
 0x5db   :  { %v2146_v45 = vsel %vm2126_vm7, %v2112_v19, %v3112_v31 }
 0x5dc   :  { %2155 = vrot.lane.b32.xlu1 %v2146_v45, %s3702_s5  ;;  %v2145_v46 = vsel %vm2125_vm8, %v2107_v23, %v3111_v44  ;;  %v3594_v47 = vpop.eup %3593  ;;  %v2206_v23 = vld [vmem:[%s4309_s6 + $0x8] sm:$0xff] }
 0x5dd   :  { %2153 = vrot.lane.b32.xlu0 %v2145_v46, %s3702_s5  ;;  %v3596_v39 = vpop.eup %3595  ;;  %v3114_v48 = vadd.f32 -1.0, %v3594_v47  ;;  %v3708_v47 = vmov 12  }
 0x5de   :  { %v3113_v49 = vadd.f32 -1.0, %v3596_v39 }
 0x5df   :  { %v2148_v32 = vsel %vm2128_vm9, %v2122_v36, %v3114_v48  ;;  %v2514_v36 = vld [vmem:[%s4310_s7] sm:$0xff] }
 0x5e0   :  { %2171 = vrot.lane.b32.xlu1 %v2146_v45, %s3703_s17  ;;  %v2147_v50 = vsel %vm2127_vm10, %v2117_v38, %v3113_v49  ;;  %3289 = vmatprep.mubr.msk.f32.mxu0 %vm1488_vm2, %v2514_v36  ;;  %vm2934_vm10 = vcmask 9216  }
 0x5e1   :  { %2169 = vrot.lane.b32.xlu0 %v2145_v46, %s3703_s17 }
 0x5e4   :  { %2187 = vrot.lane.b32.xlu1 %v2146_v45, %s3704_s18 }
 0x5e5   :  { %2185 = vrot.lane.b32.xlu0 %v2145_v46, %s3704_s18 }
 0x5e8   :  { %2159 = vrot.lane.b32.xlu1 %v2148_v32, %s3702_s5 }
 0x5e9   :  { %2157 = vrot.lane.b32.xlu0 %v2147_v50, %s3702_s5 }
 0x5ec   :  { %2175 = vrot.lane.b32.xlu1 %v2148_v32, %s3703_s17 }
 0x5ed   :  { %2173 = vrot.lane.b32.xlu0 %v2147_v50, %s3703_s17 }
 0x5f0   :  { %2191 = vrot.lane.b32.xlu1 %v2148_v32, %s3704_s18 }
 0x5f1   :  { %2189 = vrot.lane.b32.xlu0 %v2147_v50, %s3704_s18 }
 0x5f4   :  { %2214 = vperm.xlu1 %3536, %v3939_v33  }
 0x5f5   :  { %2210 = vperm.xlu0 %3535, %v3934_v40  }
 0x5f8   :  { %2218 = vperm.xlu1 %3536, %v3951_v17  }
 0x5f9   :  { %2222 = vperm.xlu0 %3535, %v3945_v42  }
 0x5fc   :  { %3537 = vset.pattern.permute.xlu1 %v3706_v53 }
 0x5fd   :  { %2367 = vperm.xlu1 %3537, %v3934_v40   ;;  %3538 = vset.pattern.permute.xlu0 %v3706_v53 }
 0x5fe   :  { %2371 = vperm.xlu0 %3538, %v3939_v33  }
 0x601   :  { %3539 = vset.pattern.permute.xlu1 %v3707_v54 }
 0x602   :  { %2387 = vperm.xlu1 %3539, %v3934_v40   ;;  %2375 = vperm.xlu0 %3538, %v3951_v17  }
 0x606   :  { %2391 = vperm.xlu1 %3539, %v3939_v33   ;;  %3541 = vset.pattern.permute.xlu0 %v3707_v54 }
 0x607   :  { %2395 = vperm.xlu0 %3541, %v3951_v17  }
 0x60a   :  { %3540 = vset.pattern.permute.xlu1 %v3706_v53 }
 0x60b   :  { %2379 = vperm.xlu1 %3540, %v3945_v42   ;;  %3544 = vset.pattern.permute.xlu0 %v3708_v47 }
 0x60c   :  { %2523 = vperm.xlu0 %3544, %v3939_v33  }
 0x60f   :  { %3542 = vset.pattern.permute.xlu1 %v3707_v54 }
 0x610   :  { %2399 = vperm.xlu1 %3542, %v3945_v42  }
 0x614   :  { %3543 = vset.pattern.permute.xlu1 %v3708_v47 }
 0x615   :  { %2519 = vperm.xlu1 %3543, %v3934_v40  }
 0x619   :  { %2527 = vperm.xlu1 %3543, %v3951_v17  }
 0x61d   :  { %2531 = vperm.xlu1 %3543, %v3945_v42  }
 0x64e   :  { %v2156_v56 = vpop.permute.xlu1 %2155 }
 0x64f   :  { %v2154_v57 = vpop.permute.xlu0 %2153  ;;  %v2166_v22 = vadd.f32 %v2156_v56, %v2146_v45 }
 0x650   :  { %v2165_v60 = vadd.f32 %v2154_v57, %v2145_v46 }
 0x652   :  { %v2172_v58 = vpop.permute.xlu1 %2171 }
 0x653   :  { %v2170_v59 = vpop.permute.xlu0 %2169  ;;  %v2182_v61 = vadd.f32 %v2172_v58, %v2166_v22 }
 0x654   :  { %v2181_v52 = vadd.f32 %v2170_v59, %v2165_v60 }
 0x656   :  { %v2188_v62 = vpop.permute.xlu1 %2187 }
 0x657   :  { %v2198_v63 = vadd.f32 %v2188_v62, %v2182_v61  ;;  %v2186_v1 = vpop.permute.xlu0 %2185 }
 0x658   :  { %v2197_v2 = vadd.f32 %v2186_v1, %v2181_v52 }
 0x659   :  { %v4139_v3 = vmul.f32 0.25, %v2198_v63 }
 0x65a   :  { %v4141_v4 = vmul.f32 0.25, %v2197_v2  ;;  %v2160_v5 = vpop.permute.xlu1 %2159 }
 0x65b   :  { %v2158_v6 = vpop.permute.xlu0 %2157  ;;  %v2168_v43 = vadd.f32 %v2160_v5, %v2148_v32 }
 0x65c   :  { %v3374_v7 = vpack.c.bf16 %v4139_v3, %v4141_v4  ;;  %v2167_v20 = vadd.f32 %v2158_v6, %v2147_v50 }
 0x65e   :  { %v2176_v8 = vpop.permute.xlu1 %2175  ;;  %3375 = vmatprep.subr.bf16.mxu1 %v3374_v7 }
 0x65f   :  { %3377 = vmatpush3.bf16.msra.mxu1 %v3374_v7  ;;  %v2174_v9 = vpop.permute.xlu0 %2173  ;;  %v2184_v0 = vadd.f32 %v2176_v8, %v2168_v43 }
 0x660   :  { %v2183_v10 = vadd.f32 %v2174_v9, %v2167_v20 }
 0x662   :  { %v2192_v11 = vpop.permute.xlu1 %2191 }
 0x663   :  { %v2200_v13 = vadd.f32 %v2192_v11, %v2184_v0  ;;  %v2190_v14 = vpop.permute.xlu0 %2189 }
 0x664   :  { %v2199_v15 = vadd.f32 %v2190_v14, %v2183_v10 }
 0x665   :  { %v4145_v16 = vmul.f32 0.25, %v2200_v13 }
 0x666   :  { %v4147_v19 = vmul.f32 0.25, %v2199_v15 }
 0x668   :  { %v3378_v21 = vpack.c.bf16 %v4145_v16, %v4147_v19 }
 0x66a   :  { %3379 = vmatprep.subr.bf16.mxu1 %v3378_v21 }
 0x66b   :  { %3381 = vmatpush3.bf16.msra.mxu1 %v3378_v21 }
 0x66e   :  { %3276 = vmatmul.mubr.msk.f32.vlgmr.msra.gmra.mrb[20].mxu1 %vm1488_vm2, %v2206_v23 }
 0x66f   :  { %3278 = vmatprep.mubr.msk.f32.mxu1 %vm1488_vm2, %v2207_v24 }
 0x672   :  { %3279 = vmatmul.mubr.msk.f32.gmra.mrb[22].mxu1 %vm1488_vm2, %v2208_v55 }
 0x673   :  { %v2215_v30 = vpop.permute.xlu1 %2214 }
 0x674   :  { %v2211_v26 = vpop.permute.xlu0 %2210 }
 0x677   :  { %v2219_v41 = vpop.permute.xlu1 %2218 }
 0x678   :  { %v2223_v25 = vpop.permute.xlu0 %2222 }
 0x67c   :  { %v2368_v8 = vpop.permute.xlu1 %2367 }
 0x67d   :  { %v2372_v13 = vpop.permute.xlu0 %2371 }
 0x681   :  { %v2388_v10 = vpop.permute.xlu1 %2387  ;;  %v2376_v15 = vpop.permute.xlu0 %2375 }
 0x685   :  { %v2392_v14 = vpop.permute.xlu1 %2391 }
 0x686   :  { %v2396_v36 = vpop.permute.xlu0 %2395 }
 0x68a   :  { %v2380_v21 = vpop.permute.xlu1 %2379 }
 0x741   :  { %v3277_v34 = vpop.f32.mrb[20].mxu1 }
 0x742   :  { %v2309_v12 = vadd.f32 %v3277_v34, %v2215_v30  ;;  %v2303_v37 = vpop.f32.mrb[21].mxu1  ;;  %v2400_v34 = vpop.permute.xlu1 %2399 }
 0x743   :  { %v2304_v38 = vadd.f32 %v2303_v37, %v2211_v26 }
 0x744   :  { %v2324_v29 = vsel %vm2322_vm11, %v2309_v12, 0.0 }
 0x745   :  { %v2323_v27 = vsel %vm2322_vm11, %v2304_v38, 0.0  ;;  %v3280_v35 = vpop.f32.mrb[22].mxu1 }
 0x746   :  { %v2325_v28 = vadd.f32 %v2324_v29, %v2323_v27  ;;  %v2313_v31 = vpop.f32.mrb[23].mxu1  ;;  %v2319_v44 = vadd.f32 %v3280_v35, %v2223_v25 }
 0x747   :  { %v2314_v45 = vadd.f32 %v2313_v31, %v2219_v41 }
 0x748   :  { %v2328_v48 = vsel %vm2322_vm11, %v2319_v44, 0.0 }
 0x749   :  { %v2326_v46 = vsel %vm2322_vm11, %v2314_v45, 0.0 }
 0x74a   :  { %v2327_v39 = vadd.f32 %v2326_v46, %v2325_v28 }
 0x74c   :  { %v2329_v49 = vadd.f32 %v2328_v48, %v2327_v39 }
 0x74e   :  { %v2330_v32 = vrot.slane %v2329_v49, 4 }
 0x750   :  { %v2331_v50 = vadd.f32 %v2330_v32, %v2329_v49 }
 0x752   :  { %v2332_v51 = vrot.slane %v2331_v50, 2 }
 0x754   :  { %v2333_v18 = vadd.f32 %v2332_v51, %v2331_v50 }
 0x756   :  { %v2334_v53 = vrot.slane %v2333_v18, 1 }
 0x758   :  { %v2335_v54 = vadd.f32 %v2334_v53, %v2333_v18 }
 0x75a   :  { %v2337_v56 = vmul.f32 0.03125, %v2335_v54 }
 0x75c   :  { %v2340_v57 = vsub.f32 %v2314_v45, %v2337_v56  ;;  %v2341_v58 = vsub.f32 %v2319_v44, %v2337_v56  ;;  %v2338_v22 = vsub.f32 %v2304_v38, %v2337_v56  ;;  %v2339_v40 = vsub.f32 %v2309_v12, %v2337_v56 }
 0x75e   :  { %v2344_v59 = vmul.f32 %v2340_v57, %v2340_v57  ;;  %v2342_v33 = vmul.f32 %v2338_v22, %v2338_v22  ;;  %v2343_v60 = vmul.f32 %v2339_v40, %v2339_v40  ;;  %v2345_v61 = vmul.f32 %v2341_v58, %v2341_v58 }
 0x760   :  { %v2346_v52 = vsel %vm2322_vm11, %v2342_v33, 0.0  ;;  %v2347_v17 = vsel %vm2322_vm11, %v2343_v60, 0.0  ;;  %v2349_v63 = vsel %vm2322_vm11, %v2344_v59, 0.0  ;;  %v2351_v1 = vsel %vm2322_vm11, %v2345_v61, 0.0 }
 0x761   :  { %v2348_v62 = vadd.f32 %v2347_v17, %v2346_v52 }
 0x763   :  { %v2350_v42 = vadd.f32 %v2349_v63, %v2348_v62 }
 0x765   :  { %v2352_v2 = vadd.f32 %v2351_v1, %v2350_v42 }
 0x767   :  { %v2353_v5 = vrot.slane %v2352_v2, 4 }
 0x769   :  { %v2354_v6 = vadd.f32 %v2353_v5, %v2352_v2 }
 0x76b   :  { %v2355_v7 = vrot.slane %v2354_v6, 2 }
 0x76d   :  { %v2356_v43 = vadd.f32 %v2355_v7, %v2354_v6 }
 0x76f   :  { %v2357_v9 = vrot.slane %v2356_v43, 1 }
 0x771   :  { %v2358_v20 = vadd.f32 %v2357_v9, %v2356_v43 }
 0x773   :  { %v2359_v0 = vmul.f32 0.03125, %v2358_v20 }
 0x775   :  { %v2360_v11 = vadd.f32 1e-05, %v2359_v0 }
 0x777   :  { %3597 = vrsqrt.f32 %v2360_v11 }
 0x781   :  { %v3598_v23 = vpop.eup %3597 }
 0x782   :  { %v2362_v24 = vmul.f32 %v3598_v23, %v2338_v22  ;;  %v2363_v55 = vmul.f32 %v3598_v23, %v2339_v40  ;;  %v2364_v26 = vmul.f32 %v3598_v23, %v2340_v57  ;;  %v2365_v30 = vmul.f32 %v3598_v23, %v2341_v58 }
 0x784   :  { %v2382_v12 = vmul.f32 %v2368_v8, %v2362_v24  ;;  %v2383_v37 = vmul.f32 %v2372_v13, %v2363_v55  ;;  %v2384_v38 = vmul.f32 %v2376_v15, %v2364_v26  ;;  %v2385_v29 = vmul.f32 %v2380_v21, %v2365_v30 }
 0x786   :  { %v4179_v25 = vadd.f32 %v2388_v10, %v2382_v12  ;;  %v4181_v27 = vadd.f32 %v2392_v14, %v2383_v37  ;;  %v4183_v35 = vadd.f32 %v2400_v34, %v2385_v29  ;;  %v4185_v41 = vadd.f32 %v2396_v36, %v2384_v38 }
 0x788   :  { %v4188_v28 = vmul.f32 0.70710677, %v4179_v25  ;;  %v4191_v31 = vmul.f32 0.70710677, %v4181_v27  ;;  %v4194_v44 = vmul.f32 0.70710677, %v4183_v35 }
 0x789   :  { %v4197_v45 = vmul.f32 0.70710677, %v4185_v41 }
 0x78a   :  { %v2414_v46 = vand.u32 2147483647, %v4188_v28  ;;  %v2415_v47 = vand.u32 2147483647, %v4191_v31  ;;  %v2417_v39 = vand.u32 2147483647, %v4194_v44 }
 0x78b   :  { %v2416_v48 = vand.u32 2147483647, %v4197_v45  ;;  %vm2494_vm12 = vcmp.ge.f32.partialorder %v4188_v28, 0.0  ;;  %vm2495_vm13 = vcmp.ge.f32.partialorder %v4191_v31, 0.0  ;;  %vm2497_vm14 = vcmp.ge.f32.partialorder %v4194_v44, 0.0  ;;  %v2515_v44 = vld [vmem:[%s4310_s7 + $0x8] sm:$0xff] }
 0x78c   :  { %v2418_v49 = vmul.f32 0.3275911, %v2414_v46  ;;  %v2419_v32 = vmul.f32 0.3275911, %v2415_v47  ;;  %v2421_v50 = vmul.f32 0.3275911, %v2417_v39 }
 0x78d   :  { %v2420_v53 = vmul.f32 0.3275911, %v2416_v48  ;;  %v2470_v57 = vsub.f32 0.0, %v2414_v46  ;;  %v2471_v58 = vsub.f32 0.0, %v2415_v47  ;;  %v2473_v59 = vsub.f32 0.0, %v2417_v39 }
 0x78e   :  { %v2422_v51 = vadd.f32 1.0, %v2418_v49  ;;  %v2423_v18 = vadd.f32 1.0, %v2419_v32  ;;  %v2425_v54 = vadd.f32 1.0, %v2421_v50  ;;  %v2472_v52 = vsub.f32 0.0, %v2416_v48 }
 0x78f   :  { %v2424_v56 = vadd.f32 1.0, %v2420_v53  ;;  %v2474_v40 = vmul.f32 %v2470_v57, %v2414_v46  ;;  %v2475_v61 = vmul.f32 %v2471_v58, %v2415_v47  ;;  %v2477_v1 = vmul.f32 %v2473_v59, %v2417_v39 }
 0x790   :  { %3599 = vrcp.f32 %v2422_v51  ;;  %v2476_v43 = vmul.f32 %v2472_v52, %v2416_v48  ;;  %vm2496_vm15 = vcmp.ge.f32.partialorder %v4197_v45, 0.0  ;;  %v2635_v45 = vld [vmem:[%s4311_s8] sm:$0xff] }
 0x791   :  { %3601 = vrcp.f32 %v2423_v18  ;;  %v2478_v42 = vmul.f32 1.442695, %v2474_v40  ;;  %v2480_v6 = vmul.f32 1.442695, %v2475_v61  ;;  %v2484_v11 = vmul.f32 1.442695, %v2477_v1  ;;  %3303 = vmatprep.mubr.msk.f32.mxu1 %vm1488_vm2, %v2635_v45 }
 0x792   :  { %3603 = vrcp.f32 %v2425_v54  ;;  %v2482_v23 = vmul.f32 1.442695, %v2476_v43 }
 0x793   :  { %3605 = vrcp.f32 %v2424_v56 }
 0x794   :  { %3607 = vpow2.f32 %v2478_v42 }
 0x795   :  { %3609 = vpow2.f32 %v2480_v6 }
 0x796   :  { %3611 = vpow2.f32 %v2484_v11  ;;  %v2409_v11 = vmul.f32 0.5, %v4183_v35  ;;  %v2516_v35 = vld [vmem:[%s4310_s7 + $0x10] sm:$0xff] }
 0x797   :  { %3613 = vpow2.f32 %v2482_v23 }
 0x79a   :  { %v3600_v22 = vpop.eup %3599 }
 0x79b   :  { %v3602_v33 = vpop.eup %3601  ;;  %v2434_v60 = vmul.f32 1.0614054, %v3600_v22 }
 0x79c   :  { %v2435_v17 = vmul.f32 1.0614054, %v3602_v33  ;;  %v3604_v63 = vpop.eup %3603 }
 0x79d   :  { %v2438_v62 = vadd.f32 -1.4531521, %v2434_v60  ;;  %v2437_v7 = vmul.f32 1.0614054, %v3604_v63  ;;  %v3606_v8 = vpop.eup %3605 }
 0x79e   :  { %v2439_v2 = vadd.f32 -1.4531521, %v2435_v17  ;;  %v2436_v10 = vmul.f32 1.0614054, %v3606_v8  ;;  %v3608_v50 = vpop.eup %3607 }
 0x79f   :  { %v2442_v5 = vmul.f32 %v3600_v22, %v2438_v62  ;;  %v2441_v0 = vadd.f32 -1.4531521, %v2437_v7  ;;  %v3610_v18 = vpop.eup %3609 }
 0x7a0   :  { %v2443_v9 = vmul.f32 %v3602_v33, %v2439_v2  ;;  %v2440_v21 = vadd.f32 -1.4531521, %v2436_v10  ;;  %v3612_v60 = vpop.eup %3611 }
 0x7a1   :  { %v2446_v20 = vadd.f32 1.4214138, %v2442_v5  ;;  %v2445_v15 = vmul.f32 %v3604_v63, %v2441_v0  ;;  %v3614_v42 = vpop.eup %3613  ;;  %v2406_v5 = vmul.f32 0.5, %v4179_v25 }
 0x7a2   :  { %v2447_v13 = vadd.f32 1.4214138, %v2443_v9  ;;  %v2444_v30 = vmul.f32 %v3606_v8, %v2440_v21 }
 0x7a3   :  { %v2450_v14 = vmul.f32 %v3600_v22, %v2446_v20  ;;  %v2449_v26 = vadd.f32 1.4214138, %v2445_v15  ;;  %v2408_v15 = vmul.f32 0.5, %v4185_v41  ;;  %v2517_v41 = vld [vmem:[%s4310_s7 + $0x18] sm:$0xff]  ;;  %s2942_s7 = sshll.u32 %s3714_s15, 4  ;;  %s2943_s7 = int_to_ptr.vmem [resolvable:$true] %s2942_s7 }
 0x7a4   :  { %v2451_v24 = vmul.f32 %v3602_v33, %v2447_v13  ;;  %v2448_v37 = vadd.f32 1.4214138, %v2444_v30  ;;  %v3633_v30 = vld [vmem:[%s4313_s10 + $0x18] sm:$0xff]  ;;  %s3657_s2 = scalar_lea.vmem %s2943_s7, 32  ;;  %p3662_p9 = scmp.lt.s32.totalorder %s2943_s7, %s2943_s7 }
 0x7a5   :  { %v2454_v55 = vadd.f32 -0.28449672, %v2450_v14  ;;  %v2453_v12 = vmul.f32 %v3604_v63, %v2449_v26  ;;  %v3632_v26 = vld [vmem:[%s4313_s10 + $0x8] sm:$0xff]  ;;  %p3658_p8 = scmp.ne.s32.totalorder %s2943_s7, %s3657_s2  ;;  %p3663_p10 = scmp.lt.s32.totalorder %s3657_s2, %s3657_s2 }
 0x7a6   :  { %v2455_v34 = vadd.f32 -0.28449672, %v2451_v24  ;;  %v2452_v47 = vmul.f32 %v3606_v8, %v2448_v37  ;;  %v3709_v24 = vmov 13   ;;  %v61_v37 = vld [vmem:[%s4313_s10 + $0x38] sm:$0xff] }
 0x7a7   :  { %v2458_v36 = vmul.f32 %v3600_v22, %v2454_v55  ;;  %v2457_v46 = vadd.f32 -0.28449672, %v2453_v12  ;;  %3545 = vset.pattern.permute.xlu0 %v3709_v24  ;;  %3546 = vset.pattern.permute.xlu1 %v3709_v24  ;;  %v3631_v55 = vld [vmem:[%s4313_s10] sm:$0xff]  ;;  %p3664_p11 = por %p3663_p10, %p3662_p9 }
 0x7a8   :  { %v2459_v38 = vmul.f32 %v3602_v33, %v2455_v34  ;;  %v2456_v32 = vadd.f32 -0.28449672, %v2452_v47  ;;  %2644 = vperm.xlu0 %3545, %v3631_v55   ;;  %2648 = vperm.xlu1 %3546, %v3632_v26   ;;  %v3634_v34 = vld [vmem:[%s4313_s10 + $0x10] sm:$0xff]  ;;  %v58_v12 = vld [vmem:[%s4313_s10 + $0x20] sm:$0xff]  ;;  %v2524_v47 = vpop.permute.xlu0 %2523 }
 0x7a9   :  { %v2462_v29 = vadd.f32 0.2548296, %v2458_v36  ;;  %v2461_v49 = vmul.f32 %v3604_v63, %v2457_v46  ;;  %v59_v36 = vld [vmem:[%s4313_s10 + $0x28] sm:$0xff]  ;;  %p3665_p12 = pnand %p3664_p11, %p3658_p8 }
 0x7aa   :  { %v2463_v39 = vadd.f32 0.2548296, %v2459_v38  ;;  %v2460_v56 = vmul.f32 %v3606_v8, %v2456_v32  ;;  %v60_v38 = vld [vmem:[%s4313_s10 + $0x30] sm:$0xff] }
 0x7ab   :  { %v2466_v48 = vmul.f32 %v3600_v22, %v2462_v29  ;;  %v2465_v54 = vadd.f32 0.2548296, %v2461_v49  ;;  %v2520_v29 = vpop.permute.xlu1 %2519 }
 0x7ac   :  { %v2467_v51 = vmul.f32 %v3602_v33, %v2463_v39  ;;  %v2464_v59 = vadd.f32 0.2548296, %v2460_v56  ;;  %2656 = vperm.xlu0 %3545, %v3633_v30   ;;  %2652 = vperm.xlu1 %3546, %v3634_v34  }
 0x7ad   :  { %v2486_v53 = vmul.f32 %v3608_v50, %v2466_v48  ;;  %v2469_v40 = vmul.f32 %v3604_v63, %v2465_v54  ;;  %v2407_v63 = vmul.f32 0.5, %v4181_v27 }
 0x7ae   :  { %v2487_v57 = vmul.f32 %v3610_v18, %v2467_v51  ;;  %v2468_v62 = vmul.f32 %v3606_v8, %v2464_v59 }
 0x7af   :  { %v2490_v58 = vsub.f32 1.0, %v2486_v53  ;;  %v2489_v17 = vmul.f32 %v3612_v60, %v2469_v40  ;;  %v2528_v46 = vpop.permute.xlu1 %2527 }
 0x7b0   :  { %v2491_v61 = vsub.f32 1.0, %v2487_v57  ;;  %v2488_v2 = vmul.f32 %v3614_v42, %v2468_v62  ;;  %2666 = vperm.xlu0 %3545, %v59_v36   ;;  %2661 = vperm.xlu1 %3546, %v58_v12   ;;  %v3710_v62 = vmov 0.0|0.0   ;;  %v3712_v42 = vmov 0.0  }
 0x7b1   :  { %v2498_v52 = vsub.f32 0.0, %v2490_v58  ;;  %v2493_v33 = vsub.f32 1.0, %v2489_v17  ;;  %v2642_v17 = vld [vmem:[%s4311_s8 + $0x38] sm:$0xff] }
 0x7b2   :  { %v2499_v22 = vsub.f32 0.0, %v2491_v61  ;;  %v2492_v9 = vsub.f32 1.0, %v2488_v2 }
 0x7b3   :  { %v2502_v1 = vsel %vm2494_vm12, %v2490_v58, %v2498_v52  ;;  %v2501_v43 = vsub.f32 0.0, %v2493_v33  ;;  %v2532_v51 = vpop.permute.xlu1 %2531  ;;  %v2641_v52 = vld [vmem:[%s4311_s8 + $0x30] sm:$0xff] }
 0x7b4   :  { %v2506_v6 = vadd.f32 1.0, %v2502_v1  ;;  %v2503_v7 = vsel %vm2495_vm13, %v2491_v61, %v2499_v22  ;;  %v2500_v28 = vsub.f32 0.0, %v2492_v9  ;;  %2676 = vperm.xlu0 %3545, %v61_v37   ;;  %2671 = vperm.xlu1 %3546, %v60_v38   ;;  %v2640_v61 = vld [vmem:[%s4311_s8 + $0x28] sm:$0xff]  ;;  %v3713_v22 = vmov 14  }
 0x7b5   :  { %v2507_v20 = vadd.f32 1.0, %v2503_v7  ;;  %v2505_v8 = vsel %vm2497_vm14, %v2493_v33, %v2501_v43 }
 0x7b6   :  { %v2510_v0 = vmul.f32 %v2506_v6, %v2406_v5  ;;  %v2509_v31 = vadd.f32 1.0, %v2505_v8  ;;  %v2504_v13 = vsel %vm2496_vm15, %v2492_v9, %v2500_v28 }
 0x7b7   :  { %v2511_v10 = vmul.f32 %v2507_v20, %v2407_v63  ;;  %v2508_v27 = vadd.f32 1.0, %v2504_v13 }
 0x7b8   :  { %v2513_v14 = vmul.f32 %v2509_v31, %v2409_v11  ;;  %3547 = vset.pattern.permute.xlu1 %v3713_v22  ;;  %3548 = vset.pattern.permute.xlu0 %v3713_v22 }
 0x7b9   :  { %v3382_v25 = vpack.c.bf16 %v2511_v10, %v2510_v0  ;;  %v2512_v21 = vmul.f32 %v2508_v27, %v2408_v15  ;;  %2858 = vperm.xlu1 %3547, %v3631_v55  }
 0x7bb   :  { %3383 = vmatprep.subr.bf16.mxu0 %v3382_v25  ;;  %v3386_v23 = vpack.c.bf16 %v2513_v14, %v2512_v21 }
 0x7bc   :  { %3385 = vmatpush3.bf16.msra.mxu0 %v3382_v25 }
 0x7bd   :  { %3387 = vmatprep.subr.bf16.mxu0 %v3386_v23 }
 0x7c0   :  { %3389 = vmatpush3.bf16.msra.mxu0 %v3386_v23 }
 0x7c1   :  { %3398 = vmatprep.subr.bf16.mxu0 %v3710_v62 }
 0x7c3   :  { %3290 = vmatmul.mubr.msk.f32.vlgmr.msra.gmra.mrb[24].mxu0 %vm1488_vm2, %v2515_v44 }
 0x7c4   :  { %3292 = vmatprep.mubr.msk.f32.mxu0 %vm1488_vm2, %v2516_v35 }
 0x7c7   :  { %3293 = vmatmul.mubr.msk.f32.gmra.mrb[26].mxu0 %vm1488_vm2, %v2517_v41 }
 0x7c8   :  { %3331 = vmatprep.mubr.msk.f32.mxu0 %vm3711_vm0, %v3712_v42 }
 0x827   :  { %v2645_v1 = vpop.permute.xlu0 %2644  ;;  %v2649_v33 = vpop.permute.xlu1 %2648 }
 0x82b   :  { %v2657_v2 = vpop.permute.xlu0 %2656  ;;  %v2653_v6 = vpop.permute.xlu1 %2652 }
 0x82f   :  { %v2667_v11 = vpop.permute.xlu0 %2666  ;;  %v2662_v25 = vpop.permute.xlu1 %2661 }
 0x833   :  { %v2677_v24 = vpop.permute.xlu0 %2676  ;;  %v2672_v30 = vpop.permute.xlu1 %2671 }
 0x896   :  { %v3291_v39 = vpop.f32.mrb[24].mxu0 }
 0x897   :  { %v2618_v48 = vadd.f32 %v3291_v39, %v2524_v47  ;;  %v2612_v49 = vpop.f32.mrb[25].mxu0 }
 0x898   :  { %v2613_v32 = vadd.f32 %v2612_v49, %v2520_v29 }
 0x899   :  { %v2632_v50 = vadd.f32 %v2618_v48, %v4139_v3  ;;  %v2636_v3 = vld [vmem:[%s4311_s8 + $0x8] sm:$0xff] }
 0x89a   :  { %v2631_v18 = vadd.f32 %v2613_v32, %v4141_v4  ;;  %v3294_v53 = vpop.f32.mrb[26].mxu0  ;;  %v2637_v4 = vld [vmem:[%s4311_s8 + $0x10] sm:$0xff] }
 0x89b   :  { %v2628_v54 = vadd.f32 %v3294_v53, %v2532_v51  ;;  %v2622_v56 = vpop.f32.mrb[27].mxu0 }
 0x89c   :  { %v2623_v57 = vadd.f32 %v2622_v56, %v2528_v46  ;;  %v3390_v58 = vpack.c.bf16 %v2632_v50, %v2631_v18 }
 0x89d   :  { %v2634_v40 = vadd.f32 %v2628_v54, %v4145_v16  ;;  %v2638_v16 = vld [vmem:[%s4311_s8 + $0x18] sm:$0xff] }
 0x89e   :  { %v2633_v59 = vadd.f32 %v2623_v57, %v4147_v19  ;;  %3391 = vmatprep.subr.bf16.mxu1 %v3390_v58  ;;  %v2639_v19 = vld [vmem:[%s4311_s8 + $0x20] sm:$0xff] }
 0x89f   :  { %3393 = vmatpush3.bf16.msra.mxu1 %v3390_v58 }
 0x8a0   :  { %v3394_v60 = vpack.c.bf16 %v2634_v40, %v2633_v59 }
 0x8a2   :  { %3395 = vmatprep.subr.bf16.mxu1 %v3394_v60 }
 0x8a3   :  { %3397 = vmatpush3.bf16.msra.mxu1 %v3394_v60 }
 0x8a6   :  { %3304 = vmatmul.mubr.msk.f32.vlgmr.msra.gmra.mrb[24].mxu1 %vm1488_vm2, %v2636_v3 }
 0x8a7   :  { %3306 = vmatprep.mubr.msk.f32.mxu1 %vm1488_vm2, %v2637_v4 }
 0x8aa   :  { %3307 = vmatmul.mubr.msk.f32.gmra.mrb[26].mxu1 %vm1488_vm2, %v2638_v16 }
 0x8ab   :  { %3309 = vmatprep.mubr.msk.f32.mxu1 %vm1488_vm2, %v2639_v19 }
 0x8ae   :  { %3310 = vmatmul.mubr.msk.f32.gmra.mrb[28].mxu1 %vm1488_vm2, %v2640_v61 }
 0x8af   :  { %3312 = vmatprep.mubr.msk.f32.mxu1 %vm1488_vm2, %v2641_v52 }
 0x8b2   :  { %3313 = vmatmul.mubr.msk.f32.gmra.mrb[30].mxu1 %vm1488_vm2, %v2642_v17 }
 0x979   :  { %v3305_v5 = vpop.f32.mrb[24].mxu1 }
 0x97a   :  { %v2775_v7 = vadd.f32 %v3305_v5, %v2649_v33  ;;  %v2769_v63 = vpop.f32.mrb[25].mxu1 }
 0x97b   :  { %v2770_v43 = vadd.f32 %v2769_v63, %v2645_v1  ;;  %v2859_v63 = vpop.permute.xlu1 %2858 }
 0x97c   :  { %v2817_v9 = vmin.f32 %v2775_v7, 0.0  ;;  %vm2809_vm2 = vcmp.gt.f32.partialorder %v2775_v7, 0.0 }
 0x97d   :  { %v2816_v20 = vmin.f32 %v2770_v43, 0.0  ;;  %v3308_v0 = vpop.f32.mrb[26].mxu1  ;;  %vm2808_vm3 = vcmp.gt.f32.partialorder %v2770_v43, 0.0 }
 0x97e   :  { %v2826_v8 = vmul.f32 1.442695, %v2817_v9  ;;  %v2785_v28 = vadd.f32 %v3308_v0, %v2657_v2  ;;  %v2779_v10 = vpop.f32.mrb[27].mxu1 }
 0x97f   :  { %v2824_v31 = vmul.f32 1.442695, %v2816_v20  ;;  %v2780_v13 = vadd.f32 %v2779_v10, %v2653_v6 }
 0x980   :  { %3615 = vpow2.f32 %v2826_v8  ;;  %v2819_v14 = vmin.f32 %v2785_v28, 0.0  ;;  %vm2811_vm4 = vcmp.gt.f32.partialorder %v2785_v28, 0.0 }
 0x981   :  { %3617 = vpow2.f32 %v2824_v31  ;;  %v2818_v15 = vmin.f32 %v2780_v13, 0.0  ;;  %v3311_v27 = vpop.f32.mrb[28].mxu1  ;;  %vm2810_vm5 = vcmp.gt.f32.partialorder %v2780_v13, 0.0 }
 0x982   :  { %v2830_v21 = vmul.f32 1.442695, %v2819_v14  ;;  %v2795_v23 = vadd.f32 %v3311_v27, %v2667_v11  ;;  %v2789_v44 = vpop.f32.mrb[29].mxu1 }
 0x983   :  { %v2828_v35 = vmul.f32 1.442695, %v2818_v15  ;;  %v2790_v41 = vadd.f32 %v2789_v44, %v2662_v25 }
 0x984   :  { %3619 = vpow2.f32 %v2830_v21  ;;  %v2821_v45 = vmin.f32 %v2795_v23, 0.0  ;;  %vm2813_vm6 = vcmp.gt.f32.partialorder %v2795_v23, 0.0 }
 0x985   :  { %3621 = vpow2.f32 %v2828_v35  ;;  %v2820_v55 = vmin.f32 %v2790_v41, 0.0  ;;  %v3314_v26 = vpop.f32.mrb[30].mxu1  ;;  %vm2812_vm7 = vcmp.gt.f32.partialorder %v2790_v41, 0.0 }
 0x986   :  { %v2834_v34 = vmul.f32 1.442695, %v2821_v45  ;;  %v2805_v36 = vadd.f32 %v3314_v26, %v2677_v24  ;;  %v2799_v12 = vpop.f32.mrb[31].mxu1 }
 0x987   :  { %v2832_v37 = vmul.f32 1.442695, %v2820_v55  ;;  %v2800_v38 = vadd.f32 %v2799_v12, %v2672_v30 }
 0x988   :  { %3623 = vpow2.f32 %v2834_v34  ;;  %v2823_v29 = vmin.f32 %v2805_v36, 0.0  ;;  %vm2815_vm8 = vcmp.gt.f32.partialorder %v2805_v36, 0.0 }
 0x989   :  { %3625 = vpow2.f32 %v2832_v37  ;;  %v2822_v46 = vmin.f32 %v2800_v38, 0.0  ;;  %vm2814_vm9 = vcmp.gt.f32.partialorder %v2800_v38, 0.0 }
 0x98a   :  { %v3616_v47 = vpop.eup %3615  ;;  %v2838_v39 = vmul.f32 1.442695, %v2823_v29 }
 0x98b   :  { %v3618_v48 = vpop.eup %3617  ;;  %v3132_v49 = vadd.f32 -1.0, %v3616_v47  ;;  %v2836_v32 = vmul.f32 1.442695, %v2822_v46 }
 0x98c   :  { %v3131_v50 = vadd.f32 -1.0, %v3618_v48  ;;  %3627 = vpow2.f32 %v2838_v39 }
 0x98d   :  { %v2849_v51 = vsel %vm2809_vm2, %v2775_v7, %v3132_v49  ;;  %3629 = vpow2.f32 %v2836_v32  ;;  %v2856_v7 = vld [vmem:[%s4312_s9] sm:$0x3] }
 0x98e   :  { %v3620_v18 = vpop.eup %3619  ;;  %v2848_v53 = vsel %vm2808_vm3, %v2770_v43, %v3131_v50 }
 0x98f   :  { %v3622_v54 = vpop.eup %3621  ;;  %v3399_v56 = vpack.c.bf16 %v2849_v51, %v2848_v53  ;;  %v3134_v57 = vadd.f32 -1.0, %v3620_v18 }
 0x990   :  { %v3133_v58 = vadd.f32 -1.0, %v3622_v54 }
 0x991   :  { %v2851_v40 = vsel %vm2811_vm4, %v2785_v28, %v3134_v57  ;;  %3400 = vmatpush3.bf16.msra.mxu0 %v3399_v56 }
 0x992   :  { %v3624_v59 = vpop.eup %3623  ;;  %v2850_v60 = vsel %vm2810_vm5, %v2780_v13, %v3133_v58  ;;  %3401 = vmatprep.subr.bf16.mxu0 %v3710_v62 }
 0x993   :  { %v3626_v3 = vpop.eup %3625  ;;  %v3402_v4 = vpack.c.bf16 %v2851_v40, %v2850_v60  ;;  %v3136_v16 = vadd.f32 -1.0, %v3624_v59 }
 0x994   :  { %v3135_v19 = vadd.f32 -1.0, %v3626_v3 }
 0x995   :  { %v2853_v61 = vsel %vm2813_vm6, %v2795_v23, %v3136_v16  ;;  %3403 = vmatpush3.bf16.msra.mxu0 %v3402_v4 }
 0x996   :  { %v3628_v52 = vpop.eup %3627  ;;  %v2852_v17 = vsel %vm2812_vm7, %v2790_v41, %v3135_v19  ;;  %3404 = vmatprep.subr.bf16.mxu0 %v3710_v62 }
 0x997   :  { %v3630_v42 = vpop.eup %3629  ;;  %v3405_v22 = vpack.c.bf16 %v2853_v61, %v2852_v17  ;;  %v3138_v1 = vadd.f32 -1.0, %v3628_v52 }
 0x998   :  { %v3137_v33 = vadd.f32 -1.0, %v3630_v42 }
 0x999   :  { %v2855_v2 = vsel %vm2815_vm8, %v2805_v36, %v3138_v1  ;;  %3406 = vmatpush3.bf16.msra.mxu0 %v3405_v22 }
 0x99a   :  { %v2854_v5 = vsel %vm2814_vm9, %v2800_v38, %v3137_v33  ;;  %3407 = vmatprep.subr.bf16.mxu0 %v3710_v62 }
 0x99b   :  { %v3408_v6 = vpack.c.bf16 %v2855_v2, %v2854_v5 }
 0x99d   :  { %3409 = vmatpush3.bf16.msra.mxu0 %v3408_v6 }
 0x9a0   :  { %3332 = vmatmul.mubr.msk.f32.vlgmr.msra.gmra.mrb[28].mxu0 %vm1521_vm1, %v2856_v7 }
 0xa73   :  { %v2930_v43 = vpop.f32.mrb[28].mxu0 }
 0xa74   :  { %v2931_v9 = vadd.f32 %v2930_v43, %v2859_v63  ;;  %v3333_v20 = vpop.f32.mrb[29].mxu0 }
 0xa76   :  { %2935 = vst.msk [vmem:[#allocation5] sm:$0x3] %vm2934_vm10, %v2931_v9 }
 0xa77   :  { %3668 = shalt.err (!%p3665_p12)
}
 0xa78   :  { %s3669_s17 = scalar_lea.hbm %s4314_s11, 32 }
 0xa79   :  { %p3670_p13 = scmp.ne.s32.totalorder %s4314_s11, %s3669_s17  ;;  %p3673_p0 = scmp.lt.u32.totalorder %s3669_s17, %s4314_s11 }
 0xa7b   :  { %p3675_p1 = pnand %p3673_p0, %p3670_p13 }
 0xa7d   :  { %3678 = shalt.err (!%p3675_p1)
}
 0xa7e   :  { %2945 = dma.vmem_to_hbm [thread:$0]  %s2943_s7, 32, %s4314_s11, [#allocation4]  }
 0xa7f   :  { %3681 = dma.done.wait [#allocation4], 32  }
 0xa80   :  { %3682 = vsyncadd [#allocation4], 4294967264 }
 0xa81   :  { %2949 = vsyncpa [#allocation3], 1 }
 0xa82   :  { %2950 = vsyncpa [#allocation4], 1 }

</bundles_post_ra>
